<compile_context>
chip_gen: v7x
topology: tpu7x:2x2x1
jax: 0.10.0
libtpu: 0.0.40
codegen_flags: <defaults>
</compile_context>

<pallas_src>
import jax
import jax.numpy as jnp
from jax.experimental import pallas as pl
from jax.experimental.pallas import tpu as pltpu


# ---------------------------------------------------------------------------
# Fused TCN kernel (all layers, one batch tile per grid step).
# ---------------------------------------------------------------------------
def _make_tcn_kernel(dilations, has_ds, T, cpad, bblk, matmul_dtype):
    L = len(dilations)
    nd = sum(has_ds)
    M = bblk * T  # batch tile folded into the matmul M dimension

    def kernel(*refs):
        if nd > 0:
            (x_ref, w1_ref, b1_ref, w2_ref, b2_ref,
             wd_ref, bd_ref, o_ref) = refs
        else:
            (x_ref, w1_ref, b1_ref, w2_ref, b2_ref, o_ref) = refs
            wd_ref = bd_ref = None

        # (bblk, T, Cpad) -> (bblk*T, Cpad): tall LHS for the MXU.
        h = x_ref[...].reshape(M, cpad)

        # Time index of every flattened row (hoisted out of the layer loop).
        # Masking t < d also kills any cross-batch leakage from the roll.
        row_t = jax.lax.broadcasted_iota(jnp.int32, (M, cpad), 0) % T

        def mm(a, b):
            return jnp.dot(a.astype(matmul_dtype), b.astype(matmul_dtype),
                           preferred_element_type=jnp.float32)

        def causal_conv(v, w_stack, b, d):
            # y[t] = W_old @ v[t-d] + W_cur @ v[t] + b  (pad + chomp, exact)
            if d >= T:
                v_sh = jnp.zeros_like(v)          # whole history shifted out
            else:
                v_sh = pltpu.roll(v, shift=d, axis=0)        # XLU, not MXU
                v_sh = jnp.where(row_t >= d, v_sh, 0.0)      # zero first d rows
            # Fuse the two taps into one (M, 2*Cpad) x (2*Cpad, Cpad) matmul.
            vv = jnp.concatenate([v_sh, v], axis=-1)
            return mm(vv, w_stack) + b

        ds = 0
        for l in range(L):                                   # static unroll
            d = dilations[l]
            # conv1 -> tanh   (dropout = identity in eval mode)
            h1 = jnp.tanh(causal_conv(h, w1_ref[l], b1_ref[l], d))
            # conv2 -> tanh
            h2 = jnp.tanh(causal_conv(h1, w2_ref[l], b2_ref[l], d))
            # residual: 1x1 conv only when Cin != Cout (trace-time branch)
            if has_ds[l]:
                res = mm(h, wd_ref[ds]) + bd_ref[ds]
                ds += 1
            else:
                res = h
            h = jnp.tanh(h2 + res)

        o_ref[...] = h.reshape(bblk, T, cpad)

    return kernel


def _full_spec(shape):
    ndim = len(shape)
    return pl.BlockSpec(shape, lambda b, _n=ndim: (0,) * _n)


def _round_up(x, m):
    return ((x + m - 1) // m) * m


# ---------------------------------------------------------------------------
# Parameter construction (deterministic, synthetic; mirrors module shapes).
# ---------------------------------------------------------------------------
def _weight_norm_conv(key, cin, cout, ksize):
    """Effective weight of weight_norm(nn.Conv1d(cin, cout, ksize)) + bias."""
    kv, kg, kb = jax.random.split(key, 3)
    v = 0.1 * jax.random.normal(kv, (cout, cin, ksize), jnp.float32)
    g = 1.0 + 0.1 * jax.random.normal(kg, (cout,), jnp.float32)
    norm = jnp.sqrt(jnp.sum(v * v, axis=(1, 2), keepdims=True))
    w = g[:, None, None] * v / norm            # weight_norm(dim=0) folded
    b = 0.1 * jax.random.normal(kb, (cout,), jnp.float32)
    return w, b


def make_params(key, num_inputs, num_channels, kernel_size=2):
    assert kernel_size == 2  # module default; K=2 is what the kernel fuses
    layers = []
    for i, cout in enumerate(num_channels):
        cin = num_inputs if i == 0 else num_channels[i - 1]
        key, k1, k2, k3, k4 = jax.random.split(key, 5)
        w1, b1 = _weight_norm_conv(k1, cin, cout, kernel_size)
        w2, b2 = _weight_norm_conv(k2, cout, cout, kernel_size)
        if cin != cout:
            wd = 0.1 * jax.random.normal(k3, (cout, cin), jnp.float32)
            bd = 0.1 * jax.random.normal(k4, (cout,), jnp.float32)
        else:
            wd, bd = None, None        # downsample is None -> identity residual
        layers.append(dict(dilation=2 ** i, w1=w1, b1=b1, w2=w2, b2=b2,
                           wd=wd, bd=bd))
    return layers


def _pack_params(layers, cpad):
    """Pad channels to cpad lanes and stack per-layer weights for the kernel."""
    def pad2(m):
        return jnp.pad(m, ((0, cpad - m.shape[0]), (0, cpad - m.shape[1])))

    def padb(b):
        return jnp.pad(b[None, :], ((0, 0), (0, cpad - b.shape[0])))

    w1s, b1s, w2s, b2s, wds, bds = [], [], [], [], [], []
    for l in layers:
        w1, w2 = l["w1"], l["w2"]
        # stacked taps: rows [0:cpad] = tap0 (old/shifted), [cpad:] = tap1 (cur)
        w1s.append(jnp.concatenate([pad2(w1[:, :, 0].T), pad2(w1[:, :, 1].T)], 0))
        w2s.append(jnp.concatenate([pad2(w2[:, :, 0].T), pad2(w2[:, :, 1].T)], 0))
        b1s.append(padb(l["b1"]))
        b2s.append(padb(l["b2"]))
        if l["wd"] is not None:
            wds.append(pad2(l["wd"].T))
            bds.append(padb(l["bd"]))
    w1_all, b1_all = jnp.stack(w1s), jnp.stack(b1s)
    w2_all, b2_all = jnp.stack(w2s), jnp.stack(b2s)
    wd_all = jnp.stack(wds) if wds else None
    bd_all = jnp.stack(bds) if bds else None
    return w1_all, b1_all, w2_all, b2_all, wd_all, bd_all


# ---------------------------------------------------------------------------
# Full TemporalConvNet forward (Pallas) and a pure-JAX reference.
# ---------------------------------------------------------------------------
def temporal_conv_net(x_ncl, layers, *, batch_block=1,
                      matmul_dtype=jnp.float32):
    B, cin0, T = x_ncl.shape
    assert B % batch_block == 0
    couts = [l["w1"].shape[0] for l in layers]
    cpad = _round_up(max([cin0] + couts), 128)       # lane-dense channel axis
    dilations = tuple(int(l["dilation"]) for l in layers)
    has_ds = tuple(l["wd"] is not None for l in layers)
    nd = sum(has_ds)

    w1_all, b1_all, w2_all, b2_all, wd_all, bd_all = _pack_params(layers, cpad)

    x_btc = jnp.transpose(x_ncl, (0, 2, 1)).astype(jnp.float32)   # NCL -> BTC
    x_pad = jnp.pad(x_btc, ((0, 0), (0, 0), (0, cpad - cin0)))

    kernel = _make_tcn_kernel(dilations, has_ds, T, cpad, batch_block,
                              matmul_dtype)

    args = [x_pad, w1_all, b1_all, w2_all, b2_all]
    in_specs = [
        pl.BlockSpec((batch_block, T, cpad), lambda b: (b, 0, 0)),   # x
        _full_spec(w1_all.shape), _full_spec(b1_all.shape),          # conv1
        _full_spec(w2_all.shape), _full_spec(b2_all.shape),          # conv2
    ]
    if nd > 0:
        args += [wd_all, bd_all]                                     # downsample
        in_specs += [_full_spec(wd_all.shape), _full_spec(bd_all.shape)]

    out_pad = pl.pallas_call(
        kernel,
        out_shape=jax.ShapeDtypeStruct((B, T, cpad), jnp.float32),
        grid=(B // batch_block,),
        in_specs=in_specs,
        out_specs=pl.BlockSpec((batch_block, T, cpad), lambda b: (b, 0, 0)),
        compiler_params=pltpu.CompilerParams(
            dimension_semantics=("parallel",)),       # feeds both TCs on v7x
    )(*args)

    return jnp.transpose(out_pad[:, :, :couts[-1]], (0, 2, 1))      # back to NCL


def temporal_conv_net_ref(x_ncl, layers):
    """Pure-JAX reference (pad-then-chomp, exactly like the PyTorch module)."""
    h = jnp.transpose(x_ncl, (0, 2, 1))                 # (B, T, C)
    T = h.shape[1]
    for layer in layers:
        d = int(layer["dilation"])

        def shift(v, _d=d):
            return jnp.pad(v, ((0, 0), (_d, 0), (0, 0)))[:, :T, :]

        w1, b1 = layer["w1"], layer["b1"]
        h1 = jnp.tanh(shift(h) @ w1[:, :, 0].T + h @ w1[:, :, 1].T + b1)
        w2, b2 = layer["w2"], layer["b2"]
        h2 = jnp.tanh(shift(h1) @ w2[:, :, 0].T + h1 @ w2[:, :, 1].T + b2)
        if layer["wd"] is None:
            res = h
        else:
            res = h @ layer["wd"].T + layer["bd"]
        h = jnp.tanh(h2 + res)
    return jnp.transpose(h, (0, 2, 1))


# ---------------------------------------------------------------------------
if __name__ == "__main__":
    key = jax.random.PRNGKey(0)
    B, T = 2, 16
    num_inputs = 4
    num_channels = [8, 8, 16]                 # dilations 1, 2, 4

    kx, kp = jax.random.split(key)
    x = jax.random.normal(kx, (B, num_inputs, T), jnp.float32)   # NCL like PyTorch
    layers = make_params(kp, num_inputs, num_channels, kernel_size=2)

    out = temporal_conv_net(x, layers, batch_block=1)
    out = jax.block_until_ready(out)
    assert out.shape == (B, num_channels[-1], T)

    ref = temporal_conv_net_ref(x, layers)
    if not jnp.allclose(out, ref, atol=1e-4, rtol=1e-4):
        raise AssertionError("Pallas output does not match JAX reference")

    # TODO(synk): dropout is treated as eval-mode identity; training-mode
    # dropout would need pltpu.prng_* in-kernel.
    print("KERNEL_OK")
</pallas_src>

<mosaic_0001>
module attributes {stable_mosaic.version = 11 : i64} {
  func.func @kernel(%arg0: i32, %arg1: memref<1x16x128xf32, #tpu.memory_space<vmem>>, %arg2: memref<3x256x128xf32, #tpu.memory_space<vmem>>, %arg3: memref<3x1x128xf32, #tpu.memory_space<vmem>>, %arg4: memref<3x256x128xf32, #tpu.memory_space<vmem>>, %arg5: memref<3x1x128xf32, #tpu.memory_space<vmem>>, %arg6: memref<2x128x128xf32, #tpu.memory_space<vmem>>, %arg7: memref<2x1x128xf32, #tpu.memory_space<vmem>>, %arg8: memref<1x16x128xf32, #tpu.memory_space<vmem>>) attributes {dimension_semantics = [#tpu.dimension_semantics<parallel>], iteration_bounds = array<i64: 2>, scalar_prefetch = 0 : i64, scratch_operands = 0 : i64, tpu.core_type = #tpu.core_type<tc>, window_params = [{transform_indices = @transform_0, window_bounds = array<i64: 1, 16, 128>}, {pipeline_mode = #tpu.pipeline_mode<synchronous>, transform_indices = @transform_1, window_bounds = array<i64: 3, 256, 128>}, {pipeline_mode = #tpu.pipeline_mode<synchronous>, transform_indices = @transform_2, window_bounds = array<i64: 3, 1, 128>}, {pipeline_mode = #tpu.pipeline_mode<synchronous>, transform_indices = @transform_3, window_bounds = array<i64: 3, 256, 128>}, {pipeline_mode = #tpu.pipeline_mode<synchronous>, transform_indices = @transform_4, window_bounds = array<i64: 3, 1, 128>}, {pipeline_mode = #tpu.pipeline_mode<synchronous>, transform_indices = @transform_5, window_bounds = array<i64: 2, 128, 128>}, {pipeline_mode = #tpu.pipeline_mode<synchronous>, transform_indices = @transform_6, window_bounds = array<i64: 2, 1, 128>}, {transform_indices = @transform_7, window_bounds = array<i64: 1, 16, 128>}]} {
    %c0 = arith.constant 0 : index
    %c0_0 = arith.constant 0 : index
    %c0_1 = arith.constant 0 : index
    %0 = vector.load %arg1[%c0, %c0_0, %c0_1] : memref<1x16x128xf32, #tpu.memory_space<vmem>>, vector<1x16x128xf32>
    %1 = vector.shape_cast %0 : vector<1x16x128xf32> to vector<16x128xf32>
    %2 = tpu.iota {dimensions = array<i32: 0>} : vector<16x128xi32>
    %c16_i32 = arith.constant 16 : i32
    %c0_i32 = arith.constant 0 : i32
    %3 = arith.cmpi eq, %c16_i32, %c0_i32 : i32
    %c1_i32 = arith.constant 1 : i32
    %4 = arith.select %3, %c1_i32, %c16_i32 : i32
    %5 = vector.broadcast %4 : i32 to vector<16x128xi32>
    %6 = arith.remsi %2, %5 : vector<16x128xi32>
    %c0_i32_2 = arith.constant 0 : i32
    %7 = vector.broadcast %c0_i32_2 : i32 to vector<16x128xi32>
    %8 = arith.cmpi ne, %6, %7 : vector<16x128xi32>
    %c0_i32_3 = arith.constant 0 : i32
    %9 = vector.broadcast %c0_i32_3 : i32 to vector<16x128xi32>
    %10 = arith.cmpi slt, %6, %9 : vector<16x128xi32>
    %c0_i32_4 = arith.constant 0 : i32
    %11 = arith.cmpi slt, %4, %c0_i32_4 : i32
    %12 = vector.broadcast %11 : i1 to vector<16x128xi1>
    %13 = vector.broadcast %12 : vector<16x128xi1> to vector<16x128xi1>
    %14 = arith.xori %10, %13 : vector<16x128xi1>
    %15 = arith.andi %14, %8 : vector<16x128xi1>
    %16 = vector.broadcast %4 : i32 to vector<16x128xi32>
    %17 = arith.addi %6, %16 : vector<16x128xi32>
    %18 = arith.select %15, %17, %6 : vector<16x128xi1>, vector<16x128xi32>
    %c0_5 = arith.constant 0 : index
    %c0_6 = arith.constant 0 : index
    %c0_7 = arith.constant 0 : index
    %19 = vector.load %arg2[%c0_5, %c0_6, %c0_7] : memref<3x256x128xf32, #tpu.memory_space<vmem>>, vector<1x256x128xf32>
    %20 = vector.shape_cast %19 : vector<1x256x128xf32> to vector<256x128xf32>
    %c0_8 = arith.constant 0 : index
    %c0_9 = arith.constant 0 : index
    %c0_10 = arith.constant 0 : index
    %21 = vector.load %arg3[%c0_8, %c0_9, %c0_10] : memref<3x1x128xf32, #tpu.memory_space<vmem>>, vector<1x1x128xf32>
    %22 = vector.shape_cast %21 : vector<1x1x128xf32> to vector<1x128xf32>
    %c1_i32_11 = arith.constant 1 : i32
    %23 = tpu.dynamic_rotate %1 by %c1_i32_11 dim 0 : vector<16x128xf32>, i32 -> vector<16x128xf32>
    %c1_i32_12 = arith.constant 1 : i32
    %24 = vector.broadcast %c1_i32_12 : i32 to vector<16x128xi32>
    %25 = arith.cmpi sge, %18, %24 : vector<16x128xi32>
    %cst = arith.constant 0.000000e+00 : f32
    %26 = vector.broadcast %cst : f32 to vector<16x128xf32>
    %27 = arith.select %25, %23, %26 : vector<16x128xi1>, vector<16x128xf32>
    %28 = tpu.concatenate %27, %1 in 1 : vector<16x128xf32>, vector<16x128xf32> -> vector<16x256xf32>
    %cst_13 = arith.constant dense<0.000000e+00> : vector<16x128xf32>
    %29 = tpu.matmul %28, %20, %cst_13 {dimension_numbers = #tpu.dot_dimension_numbers<[1], [0], [0], [1], [0, 0, 1, 1], [], []>} : vector<16x256xf32>, vector<256x128xf32>, vector<16x128xf32> -> vector<16x128xf32>
    %30 = vector.broadcast %22 : vector<1x128xf32> to vector<16x128xf32>
    %31 = arith.addf %29, %30 : vector<16x128xf32>
    %32 = math.tanh %31 : vector<16x128xf32>
    %c0_14 = arith.constant 0 : index
    %c0_15 = arith.constant 0 : index
    %c0_16 = arith.constant 0 : index
    %33 = vector.load %arg4[%c0_14, %c0_15, %c0_16] : memref<3x256x128xf32, #tpu.memory_space<vmem>>, vector<1x256x128xf32>
    %34 = vector.shape_cast %33 : vector<1x256x128xf32> to vector<256x128xf32>
    %c0_17 = arith.constant 0 : index
    %c0_18 = arith.constant 0 : index
    %c0_19 = arith.constant 0 : index
    %35 = vector.load %arg5[%c0_17, %c0_18, %c0_19] : memref<3x1x128xf32, #tpu.memory_space<vmem>>, vector<1x1x128xf32>
    %36 = vector.shape_cast %35 : vector<1x1x128xf32> to vector<1x128xf32>
    %c1_i32_20 = arith.constant 1 : i32
    %37 = tpu.dynamic_rotate %32 by %c1_i32_20 dim 0 : vector<16x128xf32>, i32 -> vector<16x128xf32>
    %c1_i32_21 = arith.constant 1 : i32
    %38 = vector.broadcast %c1_i32_21 : i32 to vector<16x128xi32>
    %39 = arith.cmpi sge, %18, %38 : vector<16x128xi32>
    %cst_22 = arith.constant 0.000000e+00 : f32
    %40 = vector.broadcast %cst_22 : f32 to vector<16x128xf32>
    %41 = arith.select %39, %37, %40 : vector<16x128xi1>, vector<16x128xf32>
    %42 = tpu.concatenate %41, %32 in 1 : vector<16x128xf32>, vector<16x128xf32> -> vector<16x256xf32>
    %cst_23 = arith.constant dense<0.000000e+00> : vector<16x128xf32>
    %43 = tpu.matmul %42, %34, %cst_23 {dimension_numbers = #tpu.dot_dimension_numbers<[1], [0], [0], [1], [0, 0, 1, 1], [], []>} : vector<16x256xf32>, vector<256x128xf32>, vector<16x128xf32> -> vector<16x128xf32>
    %44 = vector.broadcast %36 : vector<1x128xf32> to vector<16x128xf32>
    %45 = arith.addf %43, %44 : vector<16x128xf32>
    %46 = math.tanh %45 : vector<16x128xf32>
    %c0_24 = arith.constant 0 : index
    %c0_25 = arith.constant 0 : index
    %c0_26 = arith.constant 0 : index
    %47 = vector.load %arg6[%c0_24, %c0_25, %c0_26] : memref<2x128x128xf32, #tpu.memory_space<vmem>>, vector<1x128x128xf32>
    %48 = vector.shape_cast %47 : vector<1x128x128xf32> to vector<128x128xf32>
    %cst_27 = arith.constant dense<0.000000e+00> : vector<16x128xf32>
    %49 = tpu.matmul %1, %48, %cst_27 {dimension_numbers = #tpu.dot_dimension_numbers<[1], [0], [0], [1], [0, 0, 1, 1], [], []>} : vector<16x128xf32>, vector<128x128xf32>, vector<16x128xf32> -> vector<16x128xf32>
    %c0_28 = arith.constant 0 : index
    %c0_29 = arith.constant 0 : index
    %c0_30 = arith.constant 0 : index
    %50 = vector.load %arg7[%c0_28, %c0_29, %c0_30] : memref<2x1x128xf32, #tpu.memory_space<vmem>>, vector<1x1x128xf32>
    %51 = vector.shape_cast %50 : vector<1x1x128xf32> to vector<1x128xf32>
    %52 = vector.broadcast %51 : vector<1x128xf32> to vector<16x128xf32>
    %53 = arith.addf %49, %52 : vector<16x128xf32>
    %54 = arith.addf %46, %53 : vector<16x128xf32>
    %55 = math.tanh %54 : vector<16x128xf32>
    %c1 = arith.constant 1 : index
    %c0_31 = arith.constant 0 : index
    %c0_32 = arith.constant 0 : index
    %56 = vector.load %arg2[%c1, %c0_31, %c0_32] : memref<3x256x128xf32, #tpu.memory_space<vmem>>, vector<1x256x128xf32>
    %57 = vector.shape_cast %56 : vector<1x256x128xf32> to vector<256x128xf32>
    %c1_33 = arith.constant 1 : index
    %c0_34 = arith.constant 0 : index
    %c0_35 = arith.constant 0 : index
    %58 = vector.load %arg3[%c1_33, %c0_34, %c0_35] : memref<3x1x128xf32, #tpu.memory_space<vmem>>, vector<1x1x128xf32>
    %59 = vector.shape_cast %58 : vector<1x1x128xf32> to vector<1x128xf32>
    %c2_i32 = arith.constant 2 : i32
    %60 = tpu.dynamic_rotate %55 by %c2_i32 dim 0 : vector<16x128xf32>, i32 -> vector<16x128xf32>
    %c2_i32_36 = arith.constant 2 : i32
    %61 = vector.broadcast %c2_i32_36 : i32 to vector<16x128xi32>
    %62 = arith.cmpi sge, %18, %61 : vector<16x128xi32>
    %cst_37 = arith.constant 0.000000e+00 : f32
    %63 = vector.broadcast %cst_37 : f32 to vector<16x128xf32>
    %64 = arith.select %62, %60, %63 : vector<16x128xi1>, vector<16x128xf32>
    %65 = tpu.concatenate %64, %55 in 1 : vector<16x128xf32>, vector<16x128xf32> -> vector<16x256xf32>
    %cst_38 = arith.constant dense<0.000000e+00> : vector<16x128xf32>
    %66 = tpu.matmul %65, %57, %cst_38 {dimension_numbers = #tpu.dot_dimension_numbers<[1], [0], [0], [1], [0, 0, 1, 1], [], []>} : vector<16x256xf32>, vector<256x128xf32>, vector<16x128xf32> -> vector<16x128xf32>
    %67 = vector.broadcast %59 : vector<1x128xf32> to vector<16x128xf32>
    %68 = arith.addf %66, %67 : vector<16x128xf32>
    %69 = math.tanh %68 : vector<16x128xf32>
    %c1_39 = arith.constant 1 : index
    %c0_40 = arith.constant 0 : index
    %c0_41 = arith.constant 0 : index
    %70 = vector.load %arg4[%c1_39, %c0_40, %c0_41] : memref<3x256x128xf32, #tpu.memory_space<vmem>>, vector<1x256x128xf32>
    %71 = vector.shape_cast %70 : vector<1x256x128xf32> to vector<256x128xf32>
    %c1_42 = arith.constant 1 : index
    %c0_43 = arith.constant 0 : index
    %c0_44 = arith.constant 0 : index
    %72 = vector.load %arg5[%c1_42, %c0_43, %c0_44] : memref<3x1x128xf32, #tpu.memory_space<vmem>>, vector<1x1x128xf32>
    %73 = vector.shape_cast %72 : vector<1x1x128xf32> to vector<1x128xf32>
    %c2_i32_45 = arith.constant 2 : i32
    %74 = tpu.dynamic_rotate %69 by %c2_i32_45 dim 0 : vector<16x128xf32>, i32 -> vector<16x128xf32>
    %c2_i32_46 = arith.constant 2 : i32
    %75 = vector.broadcast %c2_i32_46 : i32 to vector<16x128xi32>
    %76 = arith.cmpi sge, %18, %75 : vector<16x128xi32>
    %cst_47 = arith.constant 0.000000e+00 : f32
    %77 = vector.broadcast %cst_47 : f32 to vector<16x128xf32>
    %78 = arith.select %76, %74, %77 : vector<16x128xi1>, vector<16x128xf32>
    %79 = tpu.concatenate %78, %69 in 1 : vector<16x128xf32>, vector<16x128xf32> -> vector<16x256xf32>
    %cst_48 = arith.constant dense<0.000000e+00> : vector<16x128xf32>
    %80 = tpu.matmul %79, %71, %cst_48 {dimension_numbers = #tpu.dot_dimension_numbers<[1], [0], [0], [1], [0, 0, 1, 1], [], []>} : vector<16x256xf32>, vector<256x128xf32>, vector<16x128xf32> -> vector<16x128xf32>
    %81 = vector.broadcast %73 : vector<1x128xf32> to vector<16x128xf32>
    %82 = arith.addf %80, %81 : vector<16x128xf32>
    %83 = math.tanh %82 : vector<16x128xf32>
    %84 = arith.addf %83, %55 : vector<16x128xf32>
    %85 = math.tanh %84 : vector<16x128xf32>
    %c2 = arith.constant 2 : index
    %c0_49 = arith.constant 0 : index
    %c0_50 = arith.constant 0 : index
    %86 = vector.load %arg2[%c2, %c0_49, %c0_50] : memref<3x256x128xf32, #tpu.memory_space<vmem>>, vector<1x256x128xf32>
    %87 = vector.shape_cast %86 : vector<1x256x128xf32> to vector<256x128xf32>
    %c2_51 = arith.constant 2 : index
    %c0_52 = arith.constant 0 : index
    %c0_53 = arith.constant 0 : index
    %88 = vector.load %arg3[%c2_51, %c0_52, %c0_53] : memref<3x1x128xf32, #tpu.memory_space<vmem>>, vector<1x1x128xf32>
    %89 = vector.shape_cast %88 : vector<1x1x128xf32> to vector<1x128xf32>
    %c4_i32 = arith.constant 4 : i32
    %90 = tpu.dynamic_rotate %85 by %c4_i32 dim 0 : vector<16x128xf32>, i32 -> vector<16x128xf32>
    %c4_i32_54 = arith.constant 4 : i32
    %91 = vector.broadcast %c4_i32_54 : i32 to vector<16x128xi32>
    %92 = arith.cmpi sge, %18, %91 : vector<16x128xi32>
    %cst_55 = arith.constant 0.000000e+00 : f32
    %93 = vector.broadcast %cst_55 : f32 to vector<16x128xf32>
    %94 = arith.select %92, %90, %93 : vector<16x128xi1>, vector<16x128xf32>
    %95 = tpu.concatenate %94, %85 in 1 : vector<16x128xf32>, vector<16x128xf32> -> vector<16x256xf32>
    %cst_56 = arith.constant dense<0.000000e+00> : vector<16x128xf32>
    %96 = tpu.matmul %95, %87, %cst_56 {dimension_numbers = #tpu.dot_dimension_numbers<[1], [0], [0], [1], [0, 0, 1, 1], [], []>} : vector<16x256xf32>, vector<256x128xf32>, vector<16x128xf32> -> vector<16x128xf32>
    %97 = vector.broadcast %89 : vector<1x128xf32> to vector<16x128xf32>
    %98 = arith.addf %96, %97 : vector<16x128xf32>
    %99 = math.tanh %98 : vector<16x128xf32>
    %c2_57 = arith.constant 2 : index
    %c0_58 = arith.constant 0 : index
    %c0_59 = arith.constant 0 : index
    %100 = vector.load %arg4[%c2_57, %c0_58, %c0_59] : memref<3x256x128xf32, #tpu.memory_space<vmem>>, vector<1x256x128xf32>
    %101 = vector.shape_cast %100 : vector<1x256x128xf32> to vector<256x128xf32>
    %c2_60 = arith.constant 2 : index
    %c0_61 = arith.constant 0 : index
    %c0_62 = arith.constant 0 : index
    %102 = vector.load %arg5[%c2_60, %c0_61, %c0_62] : memref<3x1x128xf32, #tpu.memory_space<vmem>>, vector<1x1x128xf32>
    %103 = vector.shape_cast %102 : vector<1x1x128xf32> to vector<1x128xf32>
    %c4_i32_63 = arith.constant 4 : i32
    %104 = tpu.dynamic_rotate %99 by %c4_i32_63 dim 0 : vector<16x128xf32>, i32 -> vector<16x128xf32>
    %c4_i32_64 = arith.constant 4 : i32
    %105 = vector.broadcast %c4_i32_64 : i32 to vector<16x128xi32>
    %106 = arith.cmpi sge, %18, %105 : vector<16x128xi32>
    %cst_65 = arith.constant 0.000000e+00 : f32
    %107 = vector.broadcast %cst_65 : f32 to vector<16x128xf32>
    %108 = arith.select %106, %104, %107 : vector<16x128xi1>, vector<16x128xf32>
    %109 = tpu.concatenate %108, %99 in 1 : vector<16x128xf32>, vector<16x128xf32> -> vector<16x256xf32>
    %cst_66 = arith.constant dense<0.000000e+00> : vector<16x128xf32>
    %110 = tpu.matmul %109, %101, %cst_66 {dimension_numbers = #tpu.dot_dimension_numbers<[1], [0], [0], [1], [0, 0, 1, 1], [], []>} : vector<16x256xf32>, vector<256x128xf32>, vector<16x128xf32> -> vector<16x128xf32>
    %111 = vector.broadcast %103 : vector<1x128xf32> to vector<16x128xf32>
    %112 = arith.addf %110, %111 : vector<16x128xf32>
    %113 = math.tanh %112 : vector<16x128xf32>
    %c1_67 = arith.constant 1 : index
    %c0_68 = arith.constant 0 : index
    %c0_69 = arith.constant 0 : index
    %114 = vector.load %arg6[%c1_67, %c0_68, %c0_69] : memref<2x128x128xf32, #tpu.memory_space<vmem>>, vector<1x128x128xf32>
    %115 = vector.shape_cast %114 : vector<1x128x128xf32> to vector<128x128xf32>
    %cst_70 = arith.constant dense<0.000000e+00> : vector<16x128xf32>
    %116 = tpu.matmul %85, %115, %cst_70 {dimension_numbers = #tpu.dot_dimension_numbers<[1], [0], [0], [1], [0, 0, 1, 1], [], []>} : vector<16x128xf32>, vector<128x128xf32>, vector<16x128xf32> -> vector<16x128xf32>
    %c1_71 = arith.constant 1 : index
    %c0_72 = arith.constant 0 : index
    %c0_73 = arith.constant 0 : index
    %117 = vector.load %arg7[%c1_71, %c0_72, %c0_73] : memref<2x1x128xf32, #tpu.memory_space<vmem>>, vector<1x1x128xf32>
    %118 = vector.shape_cast %117 : vector<1x1x128xf32> to vector<1x128xf32>
    %119 = vector.broadcast %118 : vector<1x128xf32> to vector<16x128xf32>
    %120 = arith.addf %116, %119 : vector<16x128xf32>
    %121 = arith.addf %113, %120 : vector<16x128xf32>
    %122 = math.tanh %121 : vector<16x128xf32>
    %123 = vector.shape_cast %122 : vector<16x128xf32> to vector<1x16x128xf32>
    %c0_74 = arith.constant 0 : index
    %c0_75 = arith.constant 0 : index
    %c0_76 = arith.constant 0 : index
    %124 = vector.load %arg8[%c0_74, %c0_75, %c0_76] : memref<1x16x128xf32, #tpu.memory_space<vmem>>, vector<1x16x128xf32>
    tpu.vector_store %arg8[%c0_74, %c0_75, %c0_76], %123 {strides = array<i32>} : memref<1x16x128xf32, #tpu.memory_space<vmem>>, vector<1x16x128xf32>,
    return
  }
  func.func @transform_0(%arg0: i32) -> (i32, i32, i32) {
    %c0_i32 = arith.constant 0 : i32
    %c0_i32_0 = arith.constant 0 : i32
    %c0_i32_1 = arith.constant 0 : i32
    return %arg0, %c0_i32, %c0_i32_0 : i32, i32, i32
  }
  func.func @transform_1(%arg0: i32) -> (i32, i32, i32) {
    %c0_i32 = arith.constant 0 : i32
    %c0_i32_0 = arith.constant 0 : i32
    %c0_i32_1 = arith.constant 0 : i32
    %c0_i32_2 = arith.constant 0 : i32
    return %c0_i32, %c0_i32_0, %c0_i32_1 : i32, i32, i32
  }
  func.func @transform_2(%arg0: i32) -> (i32, i32, i32) {
    %c0_i32 = arith.constant 0 : i32
    %c0_i32_0 = arith.constant 0 : i32
    %c0_i32_1 = arith.constant 0 : i32
    %c0_i32_2 = arith.constant 0 : i32
    return %c0_i32, %c0_i32_0, %c0_i32_1 : i32, i32, i32
  }
  func.func @transform_3(%arg0: i32) -> (i32, i32, i32) {
    %c0_i32 = arith.constant 0 : i32
    %c0_i32_0 = arith.constant 0 : i32
    %c0_i32_1 = arith.constant 0 : i32
    %c0_i32_2 = arith.constant 0 : i32
    return %c0_i32, %c0_i32_0, %c0_i32_1 : i32, i32, i32
  }
  func.func @transform_4(%arg0: i32) -> (i32, i32, i32) {
    %c0_i32 = arith.constant 0 : i32
    %c0_i32_0 = arith.constant 0 : i32
    %c0_i32_1 = arith.constant 0 : i32
    %c0_i32_2 = arith.constant 0 : i32
    return %c0_i32, %c0_i32_0, %c0_i32_1 : i32, i32, i32
  }
  func.func @transform_5(%arg0: i32) -> (i32, i32, i32) {
    %c0_i32 = arith.constant 0 : i32
    %c0_i32_0 = arith.constant 0 : i32
    %c0_i32_1 = arith.constant 0 : i32
    %c0_i32_2 = arith.constant 0 : i32
    return %c0_i32, %c0_i32_0, %c0_i32_1 : i32, i32, i32
  }
  func.func @transform_6(%arg0: i32) -> (i32, i32, i32) {
    %c0_i32 = arith.constant 0 : i32
    %c0_i32_0 = arith.constant 0 : i32
    %c0_i32_1 = arith.constant 0 : i32
    %c0_i32_2 = arith.constant 0 : i32
    return %c0_i32, %c0_i32_0, %c0_i32_1 : i32, i32, i32
  }
  func.func @transform_7(%arg0: i32) -> (i32, i32, i32) {
    %c0_i32 = arith.constant 0 : i32
    %c0_i32_0 = arith.constant 0 : i32
    %c0_i32_1 = arith.constant 0 : i32
    return %arg0, %c0_i32, %c0_i32_0 : i32, i32, i32
  }
}

</mosaic_0001>

<bundles_post_ra>
// kernel: tpu_custom_call.1
= control target key start
LH: loop header
LB: loop body
LE: loop exit
PB: predicated region body
PF: predicated region fallthrough
CT: control target
= control target key end

     0   :  { %12 = vsyncpa [#allocation3], 0  ;;  %s2810_s0 = inlined_call_operand.hbm [shape: f32[2,16,128], index: 0, kind: input, shape index: {}]   ;;  %s2811_s1 = inlined_call_operand.hbm [shape: f32[3,256,128], index: 1, kind: input, shape index: {}]   ;;  %s2812_s2 = inlined_call_operand.vmem [shape: f32[3,1,128], index: 2, kind: input, shape index: {}]   ;;  %s2813_s3 = inlined_call_operand.hbm [shape: f32[3,256,128], index: 3, kind: input, shape index: {}]   ;;  %s2814_s4 = inlined_call_operand.vmem [shape: f32[3,1,128], index: 4, kind: input, shape index: {}]   ;;  %s2815_s5 = inlined_call_operand.hbm [shape: f32[2,128,128], index: 5, kind: input, shape index: {}]   ;;  %s2816_s6 = inlined_call_operand.vmem [shape: f32[2,1,128], index: 6, kind: input, shape index: {}]   ;;  %s2817_s7 = inlined_call_operand.hbm [shape: f32[2,16,128], index: 7, kind: output, shape index: {}]  }
   0x1   :  { %14 = vsyncpa [#allocation3 + $0x1], 0 }
   0x2   :  { %15 = vsyncpa [#allocation6], 0 }
   0x3   :  { %16 = vsyncpa [#allocation9], 0 }
   0x4   :  { %17 = vsyncpa [#allocation4], 0 }
   0x5   :  { %19 = vsyncpa [#allocation4 + $0x1], 0  ;;  %s2434_s24 = smov 0   ;;  %s2436_s25 = smov 0  }
   0x6   :  { %s2438_s26 = smov 0   ;;  %s2440_s27 = smov 0  }
   0x7 LB: > { %s2455_s28 = sadd.s32 4294967295, %s2383_s27   ;;  %s1447_s29 = sadd.s32 4294967294, %s2383_s27   ;;  %s2383_s27 = sphi %s2440_s27, %s2843_s27   ;;  %s2379_s26 = sphi %s2438_s26, %s2842_s26   ;;  %s2375_s25 = sphi %s2436_s25, %s2841_s25   ;;  %s2371_s24 = sphi %s2434_s24, %s2840_s24  }
   0x8   : > { %p45_p0 = scmp.ne.s32.totalorder %s2375_s25, %s2371_s24  ;;  %p2818_p1 = scmp.eq.s32.totalorder %s2455_s28, 0 }
   0x9   : > { %p201_p3 = scmp.eq.s32.totalorder %s1447_s29, 1  ;;  %p1448_p5 = scmp.ge.s32.totalorder %s2383_s27, 1 }
   0xa   : > { %p2464_p4 = por %p2818_p1, %p45_p0  ;;  %p208_p7 = scmp.lt.s32.totalorder %s2383_s27, 3 }
   0xb   : > { %p2469_p6 = por %p201_p3, %p45_p0  ;;  %s2385_s10 = smov [#allocation5]  }
   0xc   : > { %s2822_s30 = scalar_select %p2464_p4, 1, 0 }
   0xd   : > { %s2823_s8 = scalar_select %p2469_p6, 1, 0 }
   0xe   : > { %p2474_p8 = pnand %p1448_p5, %p208_p7  ;;  %s220_s11 = sshll.u32 %s2385_s10, 4  ;;  %s2478_s11 = int_to_ptr.vmem [resolvable:$true] %s220_s11 }
   0xf   : > { %2824 = sst [smem:[#allocation15_spill]] %s2823_s8  ;;  %s2386_s13 = smov [#allocation7]  }
  0x10   : > { %s2825_s9 = scalar_select %p2474_p8, 1, 0 }
  0x11   : > { %p2094_p9 = pneg %p2474_p8  ;;  %s236_s14 = sshll.u32 %s2386_s13, 4  ;;  %s2489_s14 = int_to_ptr.vmem [resolvable:$true] %s236_s14 }
  0x12   : > { %s2387_s15 = smov [#allocation8]   ;;  %s2195_s19 = scalar_lea.hbm %s2811_s1, 12288 }
  0x13   : > { %p2485_p11 = pnand %p2094_p9, %p2818_p1  ;;  %s2491_s16 = sshll.u32 %s2387_s15, 4  ;;  %s253_s16 = int_to_ptr.vmem [resolvable:$true] %s2491_s16 }
  0x14   : > { %p2196_p12 = scmp.ne.s32.totalorder %s2811_s1, %s2195_s19  ;;  %p2202_p5 = scmp.lt.u32.totalorder %s2195_s19, %s2811_s1 }
  0x15   : > { %p2501_p13 = pneg %p2485_p11 }
  0x17   : > { %p2198_p0 = pnand %p2501_p13, %p2196_p12 }
  0x19   : > { %p2199_p3 = pneg %p2198_p0 }
  0x1b   : > { %p2204_p7 = pnand %p2202_p5, %p2199_p3 }
  0x1d   : > { %2207 = shalt.err (!%p2204_p7)
}
  0x1e   : > { %s2208_s10 = scalar_lea.vmem %s2478_s11, 12288  ;;  %p2216_p2 = scmp.lt.s32.totalorder %s2478_s11, %s2478_s11 }
  0x1f   : > { %p2209_p9 = scmp.ne.s32.totalorder %s2478_s11, %s2208_s10  ;;  %p2217_p6 = scmp.lt.s32.totalorder %s2208_s10, %s2208_s10 }
  0x21   : > { %p2211_p10 = pnand %p2209_p9, %p2501_p13  ;;  %p2218_p12 = por %p2217_p6, %p2216_p2 }
  0x23   : > { %p2212_p1 = pneg %p2211_p10 }
  0x25   : > { %p2219_p0 = pnand %p2218_p12, %p2212_p1 }
  0x27   : > { %2222 = shalt.err (!%p2219_p0)
}
  0x28   : > { %s2388_s13 = smov 128   ;;  %s2389_s15 = smov 8  }
  0x29   : > { %2097 = dma.hbm_to_vmem [thread:$0]  (!%p2485_p11), %s2811_s1, 12288, %s2478_s11, [#allocation6], %s2388_s13, %s2388_s13, %s2389_s15  }
  0x2a   : > { %s2223_s21 = scalar_lea.hbm %s2813_s3, 12288 }
  0x2b   : > { %p2224_p1 = scmp.ne.s32.totalorder %s2813_s3, %s2223_s21  ;;  %p2230_p10 = scmp.lt.u32.totalorder %s2223_s21, %s2813_s3 }
  0x2d   : > { %p2226_p2 = pnand %p2224_p1, %p2501_p13 }
  0x2f   : > { %p2227_p6 = pneg %p2226_p2 }
  0x31   : > { %p2232_p3 = pnand %p2230_p10, %p2227_p6 }
  0x33   : > { %2235 = shalt.err (!%p2232_p3)
}
  0x34   : > { %s2236_s11 = scalar_lea.vmem %s2489_s14, 12288  ;;  %p2244_p12 = scmp.lt.s32.totalorder %s2489_s14, %s2489_s14 }
  0x35   : > { %p2237_p5 = scmp.ne.s32.totalorder %s2489_s14, %s2236_s11  ;;  %p2245_p0 = scmp.lt.s32.totalorder %s2236_s11, %s2236_s11 }
  0x37   : > { %p2239_p7 = pnand %p2237_p5, %p2501_p13  ;;  %p2246_p1 = por %p2245_p0, %p2244_p12 }
  0x39   : > { %p2240_p9 = pneg %p2239_p7 }
  0x3b   : > { %p2247_p2 = pnand %p2246_p1, %p2240_p9 }
  0x3d   : > { %2250 = shalt.err (!%p2247_p2)
}
  0x3e   : > { %2100 = dma.hbm_to_vmem [thread:$0]  (!%p2485_p11), %s2813_s3, 12288, %s2489_s14, [#allocation6], %s2388_s13, %s2388_s13, %s2389_s15  }
  0x3f   : > { %s2251_s20 = scalar_lea.hbm %s2815_s5, 4096 }
  0x40   : > { %p2252_p6 = scmp.ne.s32.totalorder %s2815_s5, %s2251_s20  ;;  %p2258_p5 = scmp.lt.u32.totalorder %s2251_s20, %s2815_s5 }
  0x42   : > { %p2254_p10 = pnand %p2252_p6, %p2501_p13 }
  0x44   : > { %p2255_p3 = pneg %p2254_p10 }
  0x46   : > { %p2260_p7 = pnand %p2258_p5, %p2255_p3 }
  0x48   : > { %2263 = shalt.err (!%p2260_p7)
}
  0x49   : > { %s2264_s11 = scalar_lea.vmem %s253_s16, 4096  ;;  %p2272_p1 = scmp.lt.s32.totalorder %s253_s16, %s253_s16 }
  0x4a   : > { %p2265_p9 = scmp.ne.s32.totalorder %s253_s16, %s2264_s11  ;;  %p2273_p2 = scmp.lt.s32.totalorder %s2264_s11, %s2264_s11 }
  0x4c   : > { %p2267_p12 = pnand %p2265_p9, %p2501_p13  ;;  %p2274_p4 = por %p2273_p2, %p2272_p1 }
  0x4e   : > { %p2268_p0 = pneg %p2267_p12 }
  0x50   : > { %p2275_p8 = pnand %p2274_p4, %p2268_p0 }
  0x52   : > { %2278 = shalt.err (!%p2275_p8)
}
  0x53   : > { %2103 = dma.hbm_to_vmem [thread:$0]  (!%p2485_p11), %s2815_s5, 4096, %s253_s16, [#allocation9], %s2388_s13, %s2388_s13, %s2389_s15  }
  0x54   : > { %s2574_s22 = sadd.s32 1, %s2383_s27   ;;  %s32_s17 = sadd.s32 1, %s2379_s26 }
  0x55   : > { %s29_s12 = ssub.s32 %s2383_s27, %s2574_s22  ;;  %p39_p8 = scmp.ne.s32.totalorder %s2379_s26, %s2375_s25 }
  0x56   : > { %p30_p4 = scmp.eq.s32.totalorder %s29_s12, 0  ;;  %p40_p13 = scmp.eq.s32.totalorder %s2383_s27, 0 }
  0x57   : > { %p2115_p6 = scmp.lt.s32.totalorder %s2383_s27, 2  ;;  %p2828_p3 = scmp.eq.s32.totalorder %s2455_s28, 1 }
  0x58   : > { %s2584_s18 = scalar_select %p30_p4, %s2379_s26, %s32_s17  }
  0x59   : > { %p41_p10 = por %p40_p13, %p39_p8  ;;  %p2588_p5 = por %p2828_p3, %p39_p8 }
  0x5a   : > { %s269_s20 = sand.u32 1, %s2379_s26   ;;  %s1486_s21 = sshll.u32 %s2383_s27, 8 }
  0x5b   : > { %s1453_s16 = sshll.u32 %s269_s20, 4  ;;  %s2597_s10 = scalar_lea.hbm %s2810_s0, %s1486_s21 }
  0x5c   : > { %s273_s11 = scalar_lea.vmem [#allocation2], %s1453_s16  ;;  %p2599_p11 = pnand %p2115_p6, %p41_p10 }
  0x5d   : > { %s280_s14 = sshll.u32 %s273_s11, 4  ;;  %s2605_s12 = scalar_lea.sflag [#allocation3], %s269_s20  ;;  %s2603_s14 = int_to_ptr.vmem [resolvable:$true] %s280_s14 }
  0x5e   : > { %s2279_s17 = scalar_lea.hbm %s2597_s10, 256  ;;  %p2281_p9 = pneg %p2599_p11 }
  0x5f   : > { %p2280_p7 = scmp.ne.s32.totalorder %s2597_s10, %s2279_s17  ;;  %s2284_s23 = scalar_lea.hbm %s2810_s0, 512 }
  0x60   : > { %p2285_p1 = scmp.lt.u32.totalorder %s2597_s10, %s2810_s0  ;;  %p2286_p2 = scmp.lt.u32.totalorder %s2284_s23, %s2279_s17 }
  0x61   : > { %p2282_p12 = pnand %p2281_p9, %p2280_p7  ;;  %p2288_p8 = scmp.lt.u32.totalorder %s2279_s17, %s2597_s10 }
  0x62   : > { %p2287_p4 = por %p2286_p2, %p2285_p1 }
  0x63   : > { %p2283_p0 = pneg %p2282_p12 }
  0x64   : > { %p2289_p13 = por %p2288_p8, %p2287_p4 }
  0x66   : > { %p2290_p6 = pnand %p2289_p13, %p2283_p0 }
  0x68   : > { %2293 = shalt.err (!%p2290_p6)
}
  0x69   : > { %s2294_s20 = scalar_lea.vmem %s2603_s14, 256  ;;  %s2390_s21 = smov [#allocation2]  }
  0x6a   : > { %p2295_p10 = scmp.ne.s32.totalorder %s2603_s14, %s2294_s20  ;;  %s2299_s16 = sshll.u32 %s2390_s21, 4  ;;  %s2300_s16 = int_to_ptr.vmem [resolvable:$false] %s2299_s16 }
  0x6b   : > { %s2301_s29 = scalar_lea.vmem %s2300_s16, 512  ;;  %p2302_p12 = scmp.lt.s32.totalorder %s2603_s14, %s2300_s16 }
  0x6c   : > { %p2297_p3 = pnand %p2295_p10, %p2281_p9  ;;  %p2303_p1 = scmp.lt.s32.totalorder %s2301_s29, %s2294_s20 }
  0x6e   : > { %p2298_p7 = pneg %p2297_p3  ;;  %p2304_p2 = por %p2303_p1, %p2302_p12 }
  0x70   : > { %p2305_p4 = pnand %p2304_p2, %p2298_p7 }
  0x72   : > { %2308 = shalt.err (!%p2305_p4)
}
  0x73   : > { %2107 = dma.hbm_to_vmem [thread:$0]  (!%p2599_p11), %s2597_s10, 256, %s2603_s14, %s2605_s12, %s2388_s13, %s2388_s13, %s2389_s15  }
  0x74   : > { %p2831_p9 = scmp.ne.s32.totalorder %s2825_s9, 0 }
  0x75   : > { %s2639_s17 = sand.u32 (!%p2831_p9), 1, %s2375_s25   ;;  %p2832_p0 = scmp.ne.s32.totalorder (!%p2831_p9), %s2822_s30, 0 }
  0x76   : > { %292 = sbr.rel (%p2831_p9) target bundleno = 1629 (0x65d), region = 48  ;;  %s1457_s23 = sshll.u32 (!%p2831_p9), %s2639_s17, 4 }
  0x77   : > { %s295_s11 = scalar_lea.sflag (!%p2831_p9), [#allocation3], %s2639_s17  ;;  %s2645_s8 = scalar_lea.vmem (!%p2831_p9), [#allocation2], %s1457_s23 }
  0x7d   : > { %2354 = dma.done.wait (%p2832_p0), %s295_s11, 256  }
  0x7e   : > { %2356 = vsyncadd (%p2832_p0), %s295_s11, 4294967040  ;;  %p2833_p11 = scmp.eq.s32.totalorder %s2455_s28, 0 }
  0x80   : > { %2358 = dma.done.wait (%p2833_p11), [#allocation6], 24576   ;;  %p2834_p8 = pmov %p2833_p11 }
  0x82   : > { %2360 = vsyncadd (%p2834_p8), [#allocation6], 4294942720  ;;  %p2835_p13 = pmov %p2834_p8 }
  0x83   : > { %p2836_p6 = pmov %p2834_p8 }
  0x84   : > { %2362 = dma.done.wait (%p2835_p13), [#allocation9], 4096  }
  0x85   : > { %2364 = vsyncadd (%p2836_p6), [#allocation9], 4294963200  ;;  %v386_v0 = vld [vmem:[#allocation5 + $0x80] sm:$0xff]  ;;  %v387_v1 = vld [vmem:[#allocation5 + $0x88] sm:$0xff]  ;;  %v343_v51 = vlaneseq  ;;  %s1487_s15 = sshll.u32 %s2455_s28, 8  ;;  %s340_s10 = scalar_lea.vmem [#allocation10], %s1457_s23 }
  0x86   : > { %v370_v2 = vld [vmem:[#allocation5] sm:$0xff]  ;;  %v1822_v3 = vpack.c.bf16 %v387_v1, %v386_v0  ;;  %v371_v4 = vld [vmem:[#allocation5 + $0x8] sm:$0xff]  ;;  %v388_v5 = vld [vmem:[#allocation5 + $0x90] sm:$0xff]  ;;  %s1345_s14 = sshll.u32 %s340_s10, 4  ;;  %s2764_s21 = scalar_lea.hbm %s2817_s7, %s1487_s15  ;;  %s2766_s14 = int_to_ptr.vmem [resolvable:$true] %s1345_s14 }
  0x87   : > { %v389_v6 = vld [vmem:[#allocation5 + $0x98] sm:$0xff]  ;;  %v1824_v7 = vpack.c.bf16 %v371_v4, %v370_v2  ;;  %v372_v9 = vld [vmem:[#allocation5 + $0x10] sm:$0xff]  ;;  %v390_v11 = vld [vmem:[#allocation5 + $0xa0] sm:$0xff]  ;;  %v2663_v58 = vshrl.u32 %v343_v51, 7  ;;  %s1332_s16 = scalar_lea.sflag [#allocation4], %s2639_s17  ;;  %s2309_s29 = scalar_lea.vmem %s2766_s14, 256 }
  0x88   : > { %v1826_v8 = vpack.c.bf16 %v389_v6, %v388_v5  ;;  %v373_v10 = vld [vmem:[#allocation5 + $0x18] sm:$0xff]  ;;  %1823 = vmatprep.subr.bf16.mxu0 %v1822_v3  ;;  %v391_v12 = vld [vmem:[#allocation5 + $0xa8] sm:$0xff]  ;;  %v374_v15 = vld [vmem:[#allocation5 + $0x20] sm:$0xff]  ;;  %p2310_p10 = scmp.ne.s32.totalorder %s2766_s14, %s2309_s29  ;;  %s2391_s28 = smov [#allocation10]  }
  0x89   : > { %1825 = vmatpush3.bf16.msra.mxu0 %v1824_v7  ;;  %v1828_v13 = vpack.c.bf16 %v373_v10, %v372_v9  ;;  %v1830_v14 = vpack.c.bf16 %v391_v12, %v390_v11  ;;  %v375_v16 = vld [vmem:[#allocation5 + $0x28] sm:$0xff]  ;;  %v392_v17 = vld [vmem:[#allocation5 + $0xb0] sm:$0xff]  ;;  %v393_v18 = vld [vmem:[#allocation5 + $0xb8] sm:$0xff]  ;;  %v2670_v1 = vand.u32 15, %v2663_v58  ;;  %vm405_vm0 = vcmp.lt.s32.totalorder %v2663_v58, 1  ;;  %s2313_s23 = sshll.u32 %s2391_s28, 4  ;;  %s2314_s23 = int_to_ptr.vmem [resolvable:$false] %s2313_s23 }
  0x8a   : > { %1827 = vmatprep.subr.bf16.mxu0 %v1826_v8  ;;  %v1832_v19 = vpack.c.bf16 %v375_v16, %v374_v15  ;;  %v1834_v20 = vpack.c.bf16 %v393_v18, %v392_v17  ;;  %v376_v21 = vld [vmem:[#allocation5 + $0x30] sm:$0xff]  ;;  %v377_v22 = vld [vmem:[#allocation5 + $0x38] sm:$0xff]  ;;  %v394_v23 = vld [vmem:[#allocation5 + $0xc0] sm:$0xff]  ;;  %vm756_vm2 = vcmp.lt.s32.totalorder %v2663_v58, 2  ;;  %vm1011_vm4 = vcmp.lt.s32.totalorder %v2663_v58, 4  ;;  %p2311_p3 = pnand %p2310_p10, %p2588_p5  ;;  %s2315_s11 = scalar_lea.vmem %s2314_s23, 512 }
  0x8b   : > { %v395_v24 = vld [vmem:[#allocation5 + $0xc8] sm:$0xff]  ;;  %v2660_v25 = vld [vmem:[%s2645_s8] sm:$0xff]  ;;  %v1836_v30 = vpack.c.bf16 %v377_v22, %v376_v21  ;;  %v514_v37 = vld [vmem:[#allocation7 + $0x98] sm:$0xff]  ;;  %vm408_vm1 = vcmp.ge.s32.totalorder %v2670_v1, 1  ;;  %vm759_vm3 = vcmp.ge.s32.totalorder %v2670_v1, 2  ;;  %vm1014_vm5 = vcmp.ge.s32.totalorder %v2670_v1, 4  ;;  %p2316_p12 = scmp.lt.s32.totalorder %s2766_s14, %s2314_s23  ;;  %p2317_p1 = scmp.lt.s32.totalorder %s2315_s11, %s2309_s29 }
  0x8c   : > { %v378_v26 = vld [vmem:[#allocation5 + $0x40] sm:$0xff]  ;;  %v379_v27 = vld [vmem:[#allocation5 + $0x48] sm:$0xff]  ;;  %482 = vmatprep.mubr.f32.mxu0 %v2660_v25  ;;  %v513_v34 = vld [vmem:[#allocation7 + $0x90] sm:$0xff]  ;;  %v1838_v35 = vpack.c.bf16 %v395_v24, %v394_v23  ;;  %v403_v0 = vrot.slane %v2660_v25, 7  ;;  %p2312_p7 = pneg %p2311_p3 }
  0x8d   : > { %1829 = vmatpush3.bf16.msra.mxu0 %v1828_v13  ;;  %v511_v28 = vld [vmem:[#allocation7 + $0x80] sm:$0xff]  ;;  %v512_v29 = vld [vmem:[#allocation7 + $0x88] sm:$0xff]  ;;  %v497_v38 = vld [vmem:[#allocation7 + $0x10] sm:$0xff]  ;;  %v1858_v42 = vpack.c.bf16 %v514_v37, %v513_v34  ;;  %v1840_v44 = vpack.c.bf16 %v379_v27, %v378_v26  ;;  %p2318_p2 = por %p2317_p1, %p2316_p12 }
  0x8e   : > { %1831 = vmatprep.subr.bf16.mxu0 %v1830_v14  ;;  %v1854_v31 = vpack.c.bf16 %v512_v29, %v511_v28  ;;  %v495_v32 = vld [vmem:[#allocation7] sm:$0xff]  ;;  %v496_v33 = vld [vmem:[#allocation7 + $0x8] sm:$0xff]  ;;  %v498_v39 = vld [vmem:[#allocation7 + $0x18] sm:$0xff] }
  0x8f   : > { %v1856_v36 = vpack.c.bf16 %v496_v33, %v495_v32  ;;  %v396_v40 = vld [vmem:[#allocation5 + $0xd0] sm:$0xff]  ;;  %v397_v41 = vld [vmem:[#allocation5 + $0xd8] sm:$0xff]  ;;  %v1860_v43 = vpack.c.bf16 %v498_v39, %v497_v38  ;;  %v398_v48 = vld [vmem:[#allocation5 + $0xe0] sm:$0xff]  ;;  %p2319_p4 = pnand %p2318_p2, %p2312_p7 }
  0x90   : > { %1855 = vmatprep.subr.bf16.mxu1 %v1854_v31  ;;  %v1842_v45 = vpack.c.bf16 %v397_v41, %v396_v40  ;;  %v380_v46 = vld [vmem:[#allocation5 + $0x50] sm:$0xff]  ;;  %v381_v47 = vld [vmem:[#allocation5 + $0x58] sm:$0xff]  ;;  %v399_v49 = vld [vmem:[#allocation5 + $0xe8] sm:$0xff] }
  0x91   : > { %1833 = vmatpush3.bf16.msra.mxu0 %v1832_v19  ;;  %1857 = vmatpush3.bf16.msra.mxu1 %v1856_v36  ;;  %v1844_v50 = vpack.c.bf16 %v381_v47, %v380_v46  ;;  %v1846_v52 = vpack.c.bf16 %v399_v49, %v398_v48  ;;  %v382_v53 = vld [vmem:[#allocation5 + $0x60] sm:$0xff]  ;;  %v383_v54 = vld [vmem:[#allocation5 + $0x68] sm:$0xff]  ;;  %v400_v55 = vld [vmem:[#allocation5 + $0xf0] sm:$0xff] }
  0x92   : > { %1835 = vmatprep.subr.bf16.mxu0 %v1834_v20  ;;  %1859 = vmatprep.subr.bf16.mxu1 %v1858_v42  ;;  %v401_v56 = vld [vmem:[#allocation5 + $0xf8] sm:$0xff]  ;;  %v1848_v57 = vpack.c.bf16 %v383_v54, %v382_v53  ;;  %v384_v60 = vld [vmem:[#allocation5 + $0x70] sm:$0xff]  ;;  %v515_v5 = vld [vmem:[#allocation7 + $0xa0] sm:$0xff] }
  0x93   : > { %v1850_v59 = vpack.c.bf16 %v401_v56, %v400_v55  ;;  %v385_v61 = vld [vmem:[#allocation5 + $0x78] sm:$0xff]  ;;  %v516_v6 = vld [vmem:[#allocation7 + $0xa8] sm:$0xff]  ;;  %v499_v8 = vld [vmem:[#allocation7 + $0x20] sm:$0xff] }
  0x94   : > { %v2666_v62 = vld [vmem:[%s2645_s8 + $0x8] sm:$0xff]  ;;  %v1852_v63 = vpack.c.bf16 %v385_v61, %v384_v60  ;;  %v1862_v7 = vpack.c.bf16 %v516_v6, %v515_v5  ;;  %v517_v11 = vld [vmem:[#allocation7 + $0xb0] sm:$0xff]  ;;  %v617_v16 = vld [vmem:[#allocation8] sm:$0xff] }
  0x95   : > { %1837 = vmatpush3.bf16.msra.mxu0 %v1836_v30  ;;  %1861 = vmatpush3.bf16.msra.mxu1 %v1860_v43  ;;  %v404_v2 = vrot.slane %v2666_v62, 7  ;;  %v500_v9 = vld [vmem:[#allocation7 + $0x28] sm:$0xff]  ;;  %v518_v12 = vld [vmem:[#allocation7 + $0xb8] sm:$0xff]  ;;  %v501_v14 = vld [vmem:[#allocation7 + $0x30] sm:$0xff] }
  0x96   : > { %1839 = vmatprep.subr.bf16.mxu0 %v1838_v35  ;;  %v1864_v10 = vpack.c.bf16 %v500_v9, %v499_v8  ;;  %1863 = vmatprep.subr.bf16.mxu1 %v1862_v7  ;;  %v1866_v13 = vpack.c.bf16 %v518_v12, %v517_v11  ;;  %v502_v15 = vld [vmem:[#allocation7 + $0x38] sm:$0xff]  ;;  %v618_v18 = vld [vmem:[#allocation8 + $0x8] sm:$0xff]  ;;  %v519_v20 = vld [vmem:[#allocation7 + $0xc0] sm:$0xff] }
  0x97   : > { %v407_v3 = vsel %vm405_vm0, %v404_v2, %v403_v0  ;;  %v406_v4 = vsel %vm405_vm0, %v403_v0, %v404_v2  ;;  %v1868_v17 = vpack.c.bf16 %v502_v15, %v501_v14  ;;  %v1886_v19 = vpack.c.bf16 %v618_v18, %v617_v16  ;;  %v520_v21 = vld [vmem:[#allocation7 + $0xc8] sm:$0xff]  ;;  %v503_v23 = vld [vmem:[#allocation7 + $0x40] sm:$0xff]  ;;  %v620_v27 = vld [vmem:[#allocation8 + $0x18] sm:$0xff] }
  0x98   : > { %v1870_v22 = vpack.c.bf16 %v520_v21, %v519_v20  ;;  %v504_v24 = vld [vmem:[#allocation7 + $0x48] sm:$0xff]  ;;  %v521_v29 = vld [vmem:[#allocation7 + $0xd0] sm:$0xff]  ;;  %v522_v30 = vld [vmem:[#allocation7 + $0xd8] sm:$0xff] }
  0x99   : > { %1841 = vmatpush3.bf16.msra.mxu0 %v1840_v44  ;;  %1865 = vmatpush3.bf16.msra.mxu1 %v1864_v10  ;;  %v1872_v26 = vpack.c.bf16 %v504_v24, %v503_v23  ;;  %v1874_v31 = vpack.c.bf16 %v522_v30, %v521_v29  ;;  %v505_v32 = vld [vmem:[#allocation7 + $0x50] sm:$0xff]  ;;  %v506_v33 = vld [vmem:[#allocation7 + $0x58] sm:$0xff]  ;;  %v621_v34 = vld [vmem:[#allocation8 + $0x20] sm:$0xff] }
  0x9a   : > { %1843 = vmatprep.subr.bf16.mxu0 %v1842_v45  ;;  %1867 = vmatprep.subr.bf16.mxu1 %v1866_v13  ;;  %v1876_v35 = vpack.c.bf16 %v506_v33, %v505_v32  ;;  %v622_v36 = vld [vmem:[#allocation8 + $0x28] sm:$0xff]  ;;  %v523_v37 = vld [vmem:[#allocation7 + $0xe0] sm:$0xff]  ;;  %v623_v44 = vld [vmem:[#allocation8 + $0x30] sm:$0xff] }
  0x9b   : > { %v524_v38 = vld [vmem:[#allocation7 + $0xe8] sm:$0xff]  ;;  %v1894_v39 = vpack.c.bf16 %v622_v36, %v621_v34  ;;  %v507_v41 = vld [vmem:[#allocation7 + $0x60] sm:$0xff]  ;;  %v624_v45 = vld [vmem:[#allocation8 + $0x38] sm:$0xff] }
  0x9c   : > { %v1878_v40 = vpack.c.bf16 %v524_v38, %v523_v37  ;;  %v508_v42 = vld [vmem:[#allocation7 + $0x68] sm:$0xff]  ;;  %v1898_v46 = vpack.c.bf16 %v624_v45, %v623_v44  ;;  %v525_v47 = vld [vmem:[#allocation7 + $0xf0] sm:$0xff]  ;;  %v526_v48 = vld [vmem:[#allocation7 + $0xf8] sm:$0xff] }
  0x9d   : > { %1845 = vmatpush3.bf16.msra.mxu0 %v1844_v50  ;;  %1869 = vmatpush3.bf16.msra.mxu1 %v1868_v17  ;;  %v1880_v43 = vpack.c.bf16 %v508_v42, %v507_v41  ;;  %v509_v49 = vld [vmem:[#allocation7 + $0x70] sm:$0xff]  ;;  %v1882_v50 = vpack.c.bf16 %v526_v48, %v525_v47  ;;  %v510_v51 = vld [vmem:[#allocation7 + $0x78] sm:$0xff]  ;;  %v626_v53 = vld [vmem:[#allocation8 + $0x48] sm:$0xff] }
  0x9e   : > { %1847 = vmatprep.subr.bf16.mxu0 %v1846_v52  ;;  %1871 = vmatprep.subr.bf16.mxu1 %v1870_v22  ;;  %v625_v52 = vld [vmem:[#allocation8 + $0x40] sm:$0xff]  ;;  %v1884_v54 = vpack.c.bf16 %v510_v51, %v509_v49  ;;  %v627_v56 = vld [vmem:[#allocation8 + $0x50] sm:$0xff]  ;;  %v630_v61 = vld [vmem:[#allocation8 + $0x68] sm:$0xff] }
  0x9f   : > { %v1902_v55 = vpack.c.bf16 %v626_v53, %v625_v52  ;;  %v629_v60 = vld [vmem:[#allocation8 + $0x60] sm:$0xff]  ;;  %v631_v0 = vld [vmem:[#allocation8 + $0x70] sm:$0xff]  ;;  %v632_v2 = vld [vmem:[#allocation8 + $0x78] sm:$0xff] }
  0xa0   : > { %v1462_v5 = vld [vmem:[%s2812_s2] ss:$0 sm:$0xff]  ;;  %v721_v22 = vld [vmem:[#allocation5 + $0x108] sm:$0xff]  ;;  %v738_v24 = vld [vmem:[#allocation5 + $0x190] sm:$0xff] }
  0xa1   : > { %1849 = vmatpush3.bf16.msra.mxu0 %v1848_v57  ;;  %1873 = vmatpush3.bf16.msra.mxu1 %v1872_v26  ;;  %v628_v57 = vld [vmem:[#allocation8 + $0x58] sm:$0xff]  ;;  %v736_v18 = vld [vmem:[#allocation5 + $0x180] sm:$0xff]  ;;  %v725_v34 = vld [vmem:[#allocation5 + $0x128] sm:$0xff] }
  0xa2   : > { %1851 = vmatprep.subr.bf16.mxu0 %v1850_v59  ;;  %1875 = vmatprep.subr.bf16.mxu1 %v1874_v31  ;;  %v1906_v59 = vpack.c.bf16 %v628_v57, %v627_v56  ;;  %v720_v21 = vld [vmem:[#allocation5 + $0x100] sm:$0xff]  ;;  %v741_v31 = vld [vmem:[#allocation5 + $0x1a8] sm:$0xff]  ;;  %v742_v37 = vld [vmem:[#allocation5 + $0x1b0] sm:$0xff] }
  0xa3   : > { %v1920_v23 = vpack.c.bf16 %v721_v22, %v720_v21  ;;  %v740_v30 = vld [vmem:[#allocation5 + $0x1a0] sm:$0xff]  ;;  %v743_v38 = vld [vmem:[#allocation5 + $0x1b8] sm:$0xff]  ;;  %v726_v41 = vld [vmem:[#allocation5 + $0x130] sm:$0xff] }
  0xa4   : > { %v1926_v32 = vpack.c.bf16 %v741_v31, %v740_v30  ;;  %v724_v33 = vld [vmem:[#allocation5 + $0x120] sm:$0xff]  ;;  %v727_v42 = vld [vmem:[#allocation5 + $0x138] sm:$0xff]  ;;  %v745_v45 = vld [vmem:[#allocation5 + $0x1c8] sm:$0xff] }
  0xa5   : > { %1853 = vmatpush3.bf16.msra.mxu0 %v1852_v63  ;;  %1877 = vmatpush3.bf16.msra.mxu1 %v1876_v35  ;;  %v1910_v63 = vpack.c.bf16 %v630_v61, %v629_v60  ;;  %v1928_v35 = vpack.c.bf16 %v725_v34, %v724_v33  ;;  %v744_v44 = vld [vmem:[#allocation5 + $0x1c0] sm:$0xff]  ;;  %v729_v48 = vld [vmem:[#allocation5 + $0x148] sm:$0xff]  ;;  %v747_v51 = vld [vmem:[#allocation5 + $0x1d8] sm:$0xff] }
  0xa6   : > { %1887 = vmatprep.subr.bf16.mxu0 %v1886_v19  ;;  %1879 = vmatprep.subr.bf16.mxu1 %v1878_v40  ;;  %v1930_v40 = vpack.c.bf16 %v743_v38, %v742_v37  ;;  %v728_v47 = vld [vmem:[#allocation5 + $0x140] sm:$0xff]  ;;  %v730_v53 = vld [vmem:[#allocation5 + $0x150] sm:$0xff]  ;;  %v749_v57 = vld [vmem:[#allocation5 + $0x1e8] sm:$0xff] }
  0xa7   : > { %v1936_v49 = vpack.c.bf16 %v729_v48, %v728_v47  ;;  %v733_v60 = vld [vmem:[#allocation5 + $0x168] sm:$0xff]  ;;  %v870_v47 = vld [vmem:[#allocation7 + $0x1b8] sm:$0xff] }
  0xa8   : > { %1463 = vmatmul.mubr.msk.f32.vlgmr.msra.gmra.mrb[0].mxu0 %vm408_vm1, %v407_v3  ;;  %v1914_v3 = vpack.c.bf16 %v632_v2, %v631_v0  ;;  %v750_v0 = vld [vmem:[#allocation5 + $0x1f0] sm:$0xff]  ;;  %v751_v2 = vld [vmem:[#allocation5 + $0x1f8] sm:$0xff] }
  0xa9   : > { %487 = vmatprep.mubr.f32.mxu0 %v2666_v62  ;;  %1889 = vmatpush3.bf16.msra.mxu0 %v1886_v19  ;;  %v737_v19 = vld [vmem:[#allocation5 + $0x188] sm:$0xff] }
  0xaa   : > { %1881 = vmatpush3.bf16.msra.mxu1 %v1880_v43  ;;  %v1918_v20 = vpack.c.bf16 %v737_v19, %v736_v18  ;;  %v1932_v43 = vpack.c.bf16 %v727_v42, %v726_v41  ;;  %v1464_v19 = vld [vmem:[%s2814_s4] ss:$0 sm:$0xff]  ;;  %v868_v41 = vld [vmem:[#allocation7 + $0x1a8] sm:$0xff] }
  0xab   : > { %1883 = vmatprep.subr.bf16.mxu1 %v1882_v50  ;;  %v746_v50 = vld [vmem:[#allocation5 + $0x1d0] sm:$0xff] }
  0xac   : > { %488 = vmatmul.mubr.f32.gmra.mrb[2].mxu0 %v406_v4  ;;  %v1938_v52 = vpack.c.bf16 %v747_v51, %v746_v50  ;;  %v854_v50 = vld [vmem:[#allocation7 + $0x138] sm:$0xff] }
  0xad   : > { %1784 = vmatprep.mubr.f32.mxu0 %v2660_v25  ;;  %v619_v25 = vld [vmem:[#allocation8 + $0x10] sm:$0xff] }
  0xae   : > { %v1890_v28 = vpack.c.bf16 %v620_v27, %v619_v25  ;;  %1885 = vmatpush3.bf16.msra.mxu1 %v1884_v54  ;;  %v739_v25 = vld [vmem:[#allocation5 + $0x198] sm:$0xff]  ;;  %v722_v27 = vld [vmem:[#allocation5 + $0x110] sm:$0xff] }
  0xaf   : > { %1919 = vmatprep.subr.bf16.mxu1 %v1918_v20  ;;  %v1922_v26 = vpack.c.bf16 %v739_v25, %v738_v24  ;;  %v731_v54 = vld [vmem:[#allocation5 + $0x158] sm:$0xff] }
  0xb0   : > { %1891 = vmatprep.subr.bf16.mxu0 %v1890_v28  ;;  %v1940_v56 = vpack.c.bf16 %v731_v54, %v730_v53  ;;  %v872_v53 = vld [vmem:[#allocation7 + $0x1c8] sm:$0xff] }
  0xb1   : > { %1893 = vmatpush3.bf16.msra.mxu0 %v1890_v28  ;;  %v723_v28 = vld [vmem:[#allocation5 + $0x118] sm:$0xff] }
  0xb2   : > { %1895 = vmatprep.subr.bf16.mxu0 %v1894_v39  ;;  %v1924_v29 = vpack.c.bf16 %v723_v28, %v722_v27  ;;  %v1466_v27 = vld [vmem:[%s2816_s6] ss:$0 sm:$0xff] }
  0xb5   : > { %1897 = vmatpush3.bf16.msra.mxu0 %v1894_v39 }
  0xb6   : > { %1899 = vmatprep.subr.bf16.mxu0 %v1898_v46 }
  0xb9   : > { %1901 = vmatpush3.bf16.msra.mxu0 %v1898_v46  ;;  %v1934_v46 = vpack.c.bf16 %v745_v45, %v744_v44  ;;  %v852_v44 = vld [vmem:[#allocation7 + $0x128] sm:$0xff] }
  0xba   : > { %1903 = vmatprep.subr.bf16.mxu0 %v1902_v55 }
  0xbd   : > { %1905 = vmatpush3.bf16.msra.mxu0 %v1902_v55  ;;  %v748_v55 = vld [vmem:[#allocation5 + $0x1e0] sm:$0xff] }
  0xbe   : > { %1907 = vmatprep.subr.bf16.mxu0 %v1906_v59  ;;  %v1942_v61 = vpack.c.bf16 %v749_v57, %v748_v55  ;;  %v855_v55 = vld [vmem:[#allocation7 + $0x140] sm:$0xff] }
  0xc1   : > { %1909 = vmatpush3.bf16.msra.mxu0 %v1906_v59  ;;  %v732_v59 = vld [vmem:[#allocation5 + $0x160] sm:$0xff] }
  0xc2   : > { %1911 = vmatprep.subr.bf16.mxu0 %v1910_v63 }
  0xc5   : > { %1913 = vmatpush3.bf16.msra.mxu0 %v1910_v63  ;;  %v1944_v63 = vpack.c.bf16 %v733_v60, %v732_v59  ;;  %v873_v59 = vld [vmem:[#allocation7 + $0x1d0] sm:$0xff]  ;;  %v874_v60 = vld [vmem:[#allocation7 + $0x1d8] sm:$0xff] }
  0xc6   : > { %1915 = vmatprep.subr.bf16.mxu0 %v1914_v3 }
  0xc9   : > { %1917 = vmatpush3.bf16.msra.mxu0 %v1914_v3  ;;  %v734_v3 = vld [vmem:[#allocation5 + $0x170] sm:$0xff] }
  0xcc   : > { %1785 = vmatmul.mubr.f32.vlgmr.msra.gmra.mrb[4].mxu0 %v2666_v62 }
 0x17b   : > { %v1520_v4 = vpop.f32.mrb[0].mxu0 }
 0x17c   : > { %v1521_v6 = vpop.f32.mrb[1].mxu0 }
 0x17d   : > { %v1522_v7 = vadd.f32 %v1521_v6, %v1520_v4  ;;  %v1946_v4 = vpack.c.bf16 %v751_v2, %v750_v0  ;;  %v858_v0 = vld [vmem:[#allocation7 + $0x158] sm:$0xff]  ;;  %v875_v2 = vld [vmem:[#allocation7 + $0x1e0] sm:$0xff] }
 0x17f   : > { %v485_v8 = vadd.f32 %v1522_v7, %v1462_v5  ;;  %v1523_v9 = vpop.f32.mrb[2].mxu0  ;;  %v863_v7 = vld [vmem:[#allocation7 + $0x180] sm:$0xff] }
 0x180   : > { %v1524_v10 = vpop.f32.mrb[3].mxu0 }
 0x181   : > { %2159 = vtanh.f32 %v485_v8  ;;  %v1525_v11 = vadd.f32 %v1524_v10, %v1523_v9  ;;  %v864_v8 = vld [vmem:[#allocation7 + $0x188] sm:$0xff]  ;;  %v847_v9 = vld [vmem:[#allocation7 + $0x100] sm:$0xff] }
 0x182   : > { %v1950_v10 = vpack.c.bf16 %v864_v8, %v863_v7 }
 0x183   : > { %v490_v12 = vadd.f32 %v1525_v11, %v1462_v5  ;;  %v735_v5 = vld [vmem:[#allocation5 + $0x178] sm:$0xff]  ;;  %v848_v11 = vld [vmem:[#allocation7 + $0x108] sm:$0xff] }
 0x184   : > { %v1948_v6 = vpack.c.bf16 %v735_v5, %v734_v3  ;;  %1951 = vmatprep.subr.bf16.mxu0 %v1950_v10  ;;  %v859_v5 = vld [vmem:[#allocation7 + $0x160] sm:$0xff]  ;;  %v878_v10 = vld [vmem:[#allocation7 + $0x1f8] sm:$0xff] }
 0x185   : > { %2161 = vtanh.f32 %v490_v12  ;;  %v865_v12 = vld [vmem:[#allocation7 + $0x190] sm:$0xff] }
 0x18b   : > { %v2160_v13 = vpop.eup %2159 }
 0x18c   : > { %604 = vmatprep.mubr.f32.mxu1 %v2160_v13  ;;  %v528_v15 = vrot.slane %v2160_v13, 7  ;;  %v866_v13 = vld [vmem:[#allocation7 + $0x198] sm:$0xff] }
 0x18f   : > { %v2162_v14 = vpop.eup %2161 }
 0x190   : > { %v529_v16 = vrot.slane %v2162_v14, 7 }
 0x192   : > { %v531_v62 = vsel %vm405_vm0, %v529_v16, %v528_v15  ;;  %v530_v17 = vsel %vm405_vm0, %v528_v15, %v529_v16  ;;  %v1954_v15 = vpack.c.bf16 %v866_v13, %v865_v12  ;;  %v849_v16 = vld [vmem:[#allocation7 + $0x110] sm:$0xff]  ;;  %v862_v13 = vld [vmem:[#allocation7 + $0x178] sm:$0xff] }
 0x193   : > { %1465 = vmatmul.mubr.msk.f32.vlgmr.msra.gmra.mrb[0].mxu1 %vm408_vm1, %v531_v62  ;;  %v850_v62 = vld [vmem:[#allocation7 + $0x118] sm:$0xff] }
 0x194   : > { %609 = vmatprep.mubr.f32.mxu1 %v2162_v14  ;;  %1921 = vmatpush3.bf16.msra.mxu1 %v1920_v23  ;;  %v1952_v14 = vpack.c.bf16 %v848_v11, %v847_v9  ;;  %v877_v9 = vld [vmem:[#allocation7 + $0x1f0] sm:$0xff] }
 0x195   : > { %1923 = vmatprep.subr.bf16.mxu1 %v1922_v26  ;;  %v861_v11 = vld [vmem:[#allocation7 + $0x170] sm:$0xff]  ;;  %v1978_v12 = vpack.c.bf16 %v878_v10, %v877_v9  ;;  %v988_v10 = vld [vmem:[#allocation5 + $0x268] sm:$0xff] }
 0x196   : > { %1953 = vmatpush3.bf16.msra.mxu0 %v1952_v14  ;;  %v1980_v14 = vpack.c.bf16 %v862_v13, %v861_v11  ;;  %v1006_v13 = vld [vmem:[#allocation5 + $0x2f8] sm:$0xff] }
 0x197   : > { %610 = vmatmul.mubr.f32.gmra.mrb[2].mxu1 %v530_v17  ;;  %v1956_v17 = vpack.c.bf16 %v850_v62, %v849_v16  ;;  %1955 = vmatprep.subr.bf16.mxu0 %v1954_v15  ;;  %v1468_v16 = vld [vmem:[%s2812_s2 + $0x1] ss:$0 sm:$0xff] }
 0x198   : > { %1925 = vmatpush3.bf16.msra.mxu1 %v1924_v29 }
 0x199   : > { %1927 = vmatprep.subr.bf16.mxu1 %v1926_v32 }
 0x19a   : > { %1957 = vmatpush3.bf16.msra.mxu0 %v1956_v17 }
 0x19c   : > { %1929 = vmatpush3.bf16.msra.mxu1 %v1928_v35 }
 0x19d   : > { %1931 = vmatprep.subr.bf16.mxu1 %v1930_v40  ;;  %v867_v40 = vld [vmem:[#allocation7 + $0x1a0] sm:$0xff] }
 0x19e   : > { %v1958_v42 = vpack.c.bf16 %v868_v41, %v867_v40  ;;  %v977_v40 = vld [vmem:[#allocation5 + $0x210] sm:$0xff]  ;;  %v978_v41 = vld [vmem:[#allocation5 + $0x218] sm:$0xff] }
 0x19f   : > { %v2693_v36 = vpop.f32.mrb[4].mxu0 }
 0x1a0   : > { %v2695_v39 = vpop.f32.mrb[5].mxu0  ;;  %1933 = vmatpush3.bf16.msra.mxu1 %v1932_v43  ;;  %v712_v30 = vadd.f32 %v2693_v36, %v1466_v27  ;;  %v851_v43 = vld [vmem:[#allocation7 + $0x120] sm:$0xff]  ;;  %1959 = vmatprep.subr.bf16.mxu0 %v1958_v42  ;;  %v1988_v42 = vpack.c.bf16 %v978_v41, %v977_v40 }
 0x1a1   : > { %1935 = vmatprep.subr.bf16.mxu1 %v1934_v46  ;;  %v707_v28 = vadd.f32 %v1466_v27, %v2695_v39  ;;  %v1960_v45 = vpack.c.bf16 %v852_v44, %v851_v43  ;;  %v869_v46 = vld [vmem:[#allocation7 + $0x1b0] sm:$0xff]  ;;  %v995_v43 = vld [vmem:[#allocation5 + $0x2a0] sm:$0xff]  ;;  %v996_v44 = vld [vmem:[#allocation5 + $0x2a8] sm:$0xff] }
 0x1a2   : > { %v1962_v48 = vpack.c.bf16 %v870_v47, %v869_v46  ;;  %v979_v46 = vld [vmem:[#allocation5 + $0x220] sm:$0xff]  ;;  %v980_v47 = vld [vmem:[#allocation5 + $0x228] sm:$0xff] }
 0x1a3   : > { %1961 = vmatpush3.bf16.msra.mxu0 %v1960_v45  ;;  %v1990_v45 = vpack.c.bf16 %v996_v44, %v995_v43 }
 0x1a4   : > { %1937 = vmatpush3.bf16.msra.mxu1 %v1936_v49  ;;  %v853_v49 = vld [vmem:[#allocation7 + $0x130] sm:$0xff]  ;;  %1963 = vmatprep.subr.bf16.mxu0 %v1962_v48  ;;  %v1992_v48 = vpack.c.bf16 %v980_v47, %v979_v46 }
 0x1a5   : > { %1939 = vmatprep.subr.bf16.mxu1 %v1938_v52  ;;  %v1964_v51 = vpack.c.bf16 %v854_v50, %v853_v49  ;;  %v871_v52 = vld [vmem:[#allocation7 + $0x1c0] sm:$0xff]  ;;  %v997_v49 = vld [vmem:[#allocation5 + $0x2b0] sm:$0xff]  ;;  %v998_v50 = vld [vmem:[#allocation5 + $0x2b8] sm:$0xff] }
 0x1a6   : > { %v1966_v54 = vpack.c.bf16 %v872_v53, %v871_v52  ;;  %v981_v52 = vld [vmem:[#allocation5 + $0x230] sm:$0xff]  ;;  %v982_v53 = vld [vmem:[#allocation5 + $0x238] sm:$0xff] }
 0x1a7   : > { %1965 = vmatpush3.bf16.msra.mxu0 %v1964_v51  ;;  %v1994_v51 = vpack.c.bf16 %v998_v50, %v997_v49  ;;  %v1229_v49 = vld [vmem:[#allocation8 + $0x98] sm:$0xff] }
 0x1a8   : > { %1941 = vmatpush3.bf16.msra.mxu1 %v1940_v56  ;;  %v856_v56 = vld [vmem:[#allocation7 + $0x148] sm:$0xff]  ;;  %1967 = vmatprep.subr.bf16.mxu0 %v1966_v54  ;;  %v1996_v54 = vpack.c.bf16 %v982_v53, %v981_v52 }
 0x1a9   : > { %1943 = vmatprep.subr.bf16.mxu1 %v1942_v61  ;;  %v1968_v57 = vpack.c.bf16 %v856_v56, %v855_v55  ;;  %v1970_v61 = vpack.c.bf16 %v874_v60, %v873_v59  ;;  %v999_v55 = vld [vmem:[#allocation5 + $0x2c0] sm:$0xff]  ;;  %v1000_v56 = vld [vmem:[#allocation5 + $0x2c8] sm:$0xff] }
 0x1aa   : > { %v983_v59 = vld [vmem:[#allocation5 + $0x240] sm:$0xff]  ;;  %v984_v60 = vld [vmem:[#allocation5 + $0x248] sm:$0xff] }
 0x1ab   : > { %1969 = vmatpush3.bf16.msra.mxu0 %v1968_v57  ;;  %v1998_v57 = vpack.c.bf16 %v1000_v56, %v999_v55  ;;  %v1231_v55 = vld [vmem:[#allocation8 + $0xa8] sm:$0xff] }
 0x1ac   : > { %1945 = vmatpush3.bf16.msra.mxu1 %v1944_v63  ;;  %v857_v63 = vld [vmem:[#allocation7 + $0x150] sm:$0xff]  ;;  %1971 = vmatprep.subr.bf16.mxu0 %v1970_v61  ;;  %v2000_v61 = vpack.c.bf16 %v984_v60, %v983_v59  ;;  %v1233_v59 = vld [vmem:[#allocation8 + $0xb8] sm:$0xff] }
 0x1ad   : > { %1947 = vmatprep.subr.bf16.mxu1 %v1946_v4  ;;  %v1972_v3 = vpack.c.bf16 %v858_v0, %v857_v63  ;;  %v876_v4 = vld [vmem:[#allocation7 + $0x1e8] sm:$0xff]  ;;  %v1001_v63 = vld [vmem:[#allocation5 + $0x2d0] sm:$0xff]  ;;  %v1002_v0 = vld [vmem:[#allocation5 + $0x2d8] sm:$0xff] }
 0x1ae   : > { %v1974_v7 = vpack.c.bf16 %v876_v4, %v875_v2  ;;  %v2002_v2 = vpack.c.bf16 %v1002_v0, %v1001_v63  ;;  %v986_v4 = vld [vmem:[#allocation5 + $0x258] sm:$0xff]  ;;  %v1235_v63 = vld [vmem:[#allocation8 + $0xc8] sm:$0xff] }
 0x1af   : > { %1973 = vmatpush3.bf16.msra.mxu0 %v1972_v3  ;;  %v985_v3 = vld [vmem:[#allocation5 + $0x250] sm:$0xff] }
 0x1b0   : > { %1949 = vmatpush3.bf16.msra.mxu1 %v1948_v6  ;;  %v860_v6 = vld [vmem:[#allocation7 + $0x168] sm:$0xff]  ;;  %1975 = vmatprep.subr.bf16.mxu0 %v1974_v7 }
 0x1b1   : > { %v1976_v8 = vpack.c.bf16 %v860_v6, %v859_v5  ;;  %v2004_v5 = vpack.c.bf16 %v986_v4, %v985_v3  ;;  %v1003_v6 = vld [vmem:[#allocation5 + $0x2e0] sm:$0xff]  ;;  %v1004_v7 = vld [vmem:[#allocation5 + $0x2e8] sm:$0xff]  ;;  %v1237_v3 = vld [vmem:[#allocation8 + $0xd8] sm:$0xff] }
 0x1b2   : > { %v2006_v9 = vpack.c.bf16 %v1004_v7, %v1003_v6  ;;  %v1239_v6 = vld [vmem:[#allocation8 + $0xe8] sm:$0xff] }
 0x1b3   : > { %1977 = vmatpush3.bf16.msra.mxu0 %v1976_v8  ;;  %v987_v8 = vld [vmem:[#allocation5 + $0x260] sm:$0xff] }
 0x1b4   : > { %1979 = vmatprep.subr.bf16.mxu0 %v1978_v12  ;;  %v2008_v11 = vpack.c.bf16 %v988_v10, %v987_v8  ;;  %v1005_v12 = vld [vmem:[#allocation5 + $0x2f0] sm:$0xff] }
 0x1b5   : > { %v1240_v8 = vld [vmem:[#allocation8 + $0xf0] sm:$0xff] }
 0x1b7   : > { %1981 = vmatpush3.bf16.msra.mxu0 %v1980_v14  ;;  %v2010_v14 = vpack.c.bf16 %v1006_v13, %v1005_v12  ;;  %v1123_v12 = vld [vmem:[#allocation7 + $0x2a8] sm:$0xff] }
 0x266   : > { %v1558_v18 = vpop.f32.mrb[0].mxu1 }
 0x267   : > { %v1559_v20 = vpop.f32.mrb[1].mxu1 }
 0x268   : > { %v1560_v21 = vadd.f32 %v1559_v20, %v1558_v18 }
 0x26a   : > { %v607_v22 = vadd.f32 %v1560_v21, %v1464_v19  ;;  %v1561_v23 = vpop.f32.mrb[2].mxu1 }
 0x26b   : > { %v1562_v24 = vpop.f32.mrb[3].mxu1 }
 0x26c   : > { %2163 = vtanh.f32 %v607_v22  ;;  %v1563_v25 = vadd.f32 %v1562_v24, %v1561_v23 }
 0x26e   : > { %v612_v26 = vadd.f32 %v1563_v25, %v1464_v19 }
 0x270   : > { %2165 = vtanh.f32 %v612_v26 }
 0x276   : > { %v2164_v29 = vpop.eup %2163 }
 0x277   : > { %v715_v31 = vadd.f32 %v2164_v29, %v707_v28  ;;  %v991_v29 = vld [vmem:[#allocation5 + $0x280] sm:$0xff] }
 0x279   : > { %2167 = vtanh.f32 %v715_v31 }
 0x27a   : > { %v2166_v32 = vpop.eup %2165 }
 0x27b   : > { %v716_v33 = vadd.f32 %v2166_v32, %v712_v30  ;;  %v992_v30 = vld [vmem:[#allocation5 + $0x288] sm:$0xff]  ;;  %v975_v32 = vld [vmem:[#allocation5 + $0x200] sm:$0xff] }
 0x27c   : > { %v1982_v31 = vpack.c.bf16 %v992_v30, %v991_v29  ;;  %v1104_v29 = vld [vmem:[#allocation7 + $0x210] sm:$0xff]  ;;  %v1105_v30 = vld [vmem:[#allocation7 + $0x218] sm:$0xff] }
 0x27d   : > { %2169 = vtanh.f32 %v716_v33  ;;  %v976_v33 = vld [vmem:[#allocation5 + $0x208] sm:$0xff] }
 0x27e   : > { %1983 = vmatprep.subr.bf16.mxu1 %v1982_v31  ;;  %v2020_v31 = vpack.c.bf16 %v1105_v30, %v1104_v29  ;;  %v1129_v29 = vld [vmem:[#allocation7 + $0x2d8] sm:$0xff]  ;;  %v1112_v30 = vld [vmem:[#allocation7 + $0x250] sm:$0xff] }
 0x283   : > { %v2705_v34 = vpop.eup %2167 }
 0x284   : > { %833 = vmatprep.mubr.f32.mxu1 %v2705_v34  ;;  %v754_v37 = vrot.slane %v2705_v34, 6 }
 0x287   : > { %v2708_v35 = vpop.eup %2169 }
 0x288   : > { %v755_v38 = vrot.slane %v2708_v35, 6 }
 0x28a   : > { %v758_v36 = vsel %vm756_vm2, %v755_v38, %v754_v37  ;;  %v757_v39 = vsel %vm756_vm2, %v754_v37, %v755_v38  ;;  %v1984_v37 = vpack.c.bf16 %v976_v33, %v975_v32  ;;  %v993_v38 = vld [vmem:[#allocation5 + $0x290] sm:$0xff]  ;;  %v1471_v33 = vld [vmem:[%s2814_s4 + $0x1] ss:$0 sm:$0xff] }
 0x28b   : > { %1469 = vmatmul.mubr.msk.f32.vlgmr.msra.gmra.mrb[4].mxu1 %vm759_vm3, %v758_v36  ;;  %v994_v36 = vld [vmem:[#allocation5 + $0x298] sm:$0xff] }
 0x28c   : > { %838 = vmatprep.mubr.f32.mxu1 %v2708_v35  ;;  %1985 = vmatpush3.bf16.msra.mxu1 %v1984_v37 }
 0x28f   : > { %839 = vmatmul.mubr.f32.gmra.mrb[6].mxu1 %v757_v39  ;;  %v1986_v39 = vpack.c.bf16 %v994_v36, %v993_v38 }
 0x291   : > { %1987 = vmatprep.subr.bf16.mxu1 %v1986_v39 }
 0x292   : > { %1989 = vmatpush3.bf16.msra.mxu1 %v1988_v42 }
 0x293   : > { %1991 = vmatprep.subr.bf16.mxu1 %v1990_v45 }
 0x296   : > { %1993 = vmatpush3.bf16.msra.mxu1 %v1992_v48  ;;  %v1228_v48 = vld [vmem:[#allocation8 + $0x90] sm:$0xff] }
 0x297   : > { %1995 = vmatprep.subr.bf16.mxu1 %v1994_v51  ;;  %v2050_v53 = vpack.c.bf16 %v1229_v49, %v1228_v48  ;;  %v1474_v49 = vld [vmem:[%s2812_s2 + $0x2] ss:$0 sm:$0xff] }
 0x29a   : > { %1997 = vmatpush3.bf16.msra.mxu1 %v1996_v54 }
 0x29b   : > { %1999 = vmatprep.subr.bf16.mxu1 %v1998_v57  ;;  %v1232_v57 = vld [vmem:[#allocation8 + $0xb0] sm:$0xff] }
 0x29c   : > { %v2058_v60 = vpack.c.bf16 %v1233_v59, %v1232_v57 }
 0x29e   : > { %2001 = vmatpush3.bf16.msra.mxu1 %v2000_v61  ;;  %v1234_v61 = vld [vmem:[#allocation8 + $0xc0] sm:$0xff] }
 0x29f   : > { %2003 = vmatprep.subr.bf16.mxu1 %v2002_v2  ;;  %v2062_v0 = vpack.c.bf16 %v1235_v63, %v1234_v61  ;;  %v1236_v2 = vld [vmem:[#allocation8 + $0xd0] sm:$0xff] }
 0x2a0   : > { %v2066_v4 = vpack.c.bf16 %v1237_v3, %v1236_v2  ;;  %v1477_v3 = vld [vmem:[%s2814_s4 + $0x2] ss:$0 sm:$0xff] }
 0x2a2   : > { %2005 = vmatpush3.bf16.msra.mxu1 %v2004_v5  ;;  %v1238_v5 = vld [vmem:[#allocation8 + $0xe0] sm:$0xff] }
 0x2a3   : > { %2007 = vmatprep.subr.bf16.mxu1 %v2006_v9  ;;  %v2070_v7 = vpack.c.bf16 %v1239_v6, %v1238_v5  ;;  %v1241_v9 = vld [vmem:[#allocation8 + $0xf8] sm:$0xff] }
 0x2a4   : > { %v2074_v10 = vpack.c.bf16 %v1241_v9, %v1240_v8  ;;  %v1480_v9 = vld [vmem:[%s2816_s6 + $0x1] ss:$0 sm:$0xff] }
 0x2a6   : > { %2009 = vmatpush3.bf16.msra.mxu1 %v2008_v11  ;;  %v1122_v11 = vld [vmem:[#allocation7 + $0x2a0] sm:$0xff] }
 0x2a7   : > { %2011 = vmatprep.subr.bf16.mxu1 %v2010_v14  ;;  %v2022_v13 = vpack.c.bf16 %v1123_v12, %v1122_v11  ;;  %v1106_v14 = vld [vmem:[#allocation7 + $0x220] sm:$0xff] }
 0x35e   : > { %v1614_v15 = vpop.f32.mrb[4].mxu1 }
 0x35f   : > { %v1615_v62 = vpop.f32.mrb[5].mxu1 }
 0x360   : > { %v1616_v17 = vadd.f32 %v1615_v62, %v1614_v15  ;;  %v989_v15 = vld [vmem:[#allocation5 + $0x270] sm:$0xff]  ;;  %v1226_v62 = vld [vmem:[#allocation8 + $0x80] sm:$0xff] }
 0x362   : > { %v836_v18 = vadd.f32 %v1616_v17, %v1468_v16  ;;  %v1617_v19 = vpop.f32.mrb[6].mxu1 }
 0x363   : > { %v1618_v20 = vpop.f32.mrb[7].mxu1 }
 0x364   : > { %2171 = vtanh.f32 %v836_v18  ;;  %v1619_v21 = vadd.f32 %v1618_v20, %v1617_v19  ;;  %v1227_v18 = vld [vmem:[#allocation8 + $0x88] sm:$0xff]  ;;  %v1118_v20 = vld [vmem:[#allocation7 + $0x280] sm:$0xff] }
 0x365   : > { %v2046_v19 = vpack.c.bf16 %v1227_v18, %v1226_v62  ;;  %v1124_v62 = vld [vmem:[#allocation7 + $0x2b0] sm:$0xff] }
 0x366   : > { %v841_v22 = vadd.f32 %v1619_v21, %v1468_v16  ;;  %v990_v16 = vld [vmem:[#allocation5 + $0x278] sm:$0xff]  ;;  %v1119_v21 = vld [vmem:[#allocation7 + $0x288] sm:$0xff] }
 0x367   : > { %v2012_v17 = vpack.c.bf16 %v990_v16, %v989_v15  ;;  %v1107_v15 = vld [vmem:[#allocation7 + $0x228] sm:$0xff] }
 0x368   : > { %2173 = vtanh.f32 %v841_v22  ;;  %v1102_v22 = vld [vmem:[#allocation7 + $0x200] sm:$0xff]  ;;  %v2024_v16 = vpack.c.bf16 %v1107_v15, %v1106_v14 }
 0x369   : > { %2013 = vmatpush3.bf16.msra.mxu1 %v2012_v17  ;;  %v1125_v17 = vld [vmem:[#allocation7 + $0x2b8] sm:$0xff] }
 0x36a   : > { %2047 = vmatprep.subr.bf16.mxu1 %v2046_v19  ;;  %v2026_v18 = vpack.c.bf16 %v1125_v17, %v1124_v62 }
 0x36e   : > { %v2172_v23 = vpop.eup %2171 }
 0x36f   : > { %957 = vmatprep.mubr.f32.mxu0 %v2172_v23  ;;  %v881_v25 = vrot.slane %v2172_v23, 6  ;;  %v2014_v23 = vpack.c.bf16 %v1119_v21, %v1118_v20  ;;  %v1109_v20 = vld [vmem:[#allocation7 + $0x238] sm:$0xff] }
 0x371   : > { %2015 = vmatprep.subr.bf16.mxu0 %v2014_v23  ;;  %v1127_v23 = vld [vmem:[#allocation7 + $0x2c8] sm:$0xff] }
 0x372   : > { %v2174_v24 = vpop.eup %2173 }
 0x373   : > { %v882_v26 = vrot.slane %v2174_v24, 6 }
 0x375   : > { %v884_v27 = vsel %vm756_vm2, %v882_v26, %v881_v25  ;;  %v883_v28 = vsel %vm756_vm2, %v881_v25, %v882_v26  ;;  %v1120_v25 = vld [vmem:[#allocation7 + $0x290] sm:$0xff]  ;;  %v1121_v26 = vld [vmem:[#allocation7 + $0x298] sm:$0xff] }
 0x376   : > { %1472 = vmatmul.mubr.msk.f32.vlgmr.msra.gmra.mrb[6].mxu0 %vm759_vm3, %v884_v27 }
 0x377   : > { %962 = vmatprep.mubr.f32.mxu0 %v2174_v24  ;;  %v1103_v24 = vld [vmem:[#allocation7 + $0x208] sm:$0xff] }
 0x378   : > { %v2016_v27 = vpack.c.bf16 %v1103_v24, %v1102_v22  ;;  %v1126_v22 = vld [vmem:[#allocation7 + $0x2c0] sm:$0xff] }
 0x379   : > { %v2030_v24 = vpack.c.bf16 %v1127_v23, %v1126_v22 }
 0x37a   : > { %963 = vmatmul.mubr.f32.gmra.mrb[8].mxu0 %v883_v28  ;;  %v2018_v28 = vpack.c.bf16 %v1121_v26, %v1120_v25  ;;  %v1110_v25 = vld [vmem:[#allocation7 + $0x240] sm:$0xff]  ;;  %v1111_v26 = vld [vmem:[#allocation7 + $0x248] sm:$0xff] }
 0x37b   : > { %2017 = vmatpush3.bf16.msra.mxu0 %v2016_v27  ;;  %v2032_v27 = vpack.c.bf16 %v1111_v26, %v1110_v25 }
 0x37c   : > { %2019 = vmatprep.subr.bf16.mxu0 %v2018_v28  ;;  %v1128_v28 = vld [vmem:[#allocation7 + $0x2d0] sm:$0xff] }
 0x37f   : > { %2021 = vmatpush3.bf16.msra.mxu0 %v2020_v31  ;;  %v2034_v31 = vpack.c.bf16 %v1129_v29, %v1128_v28 }
 0x380   : > { %2023 = vmatprep.subr.bf16.mxu0 %v2022_v13 }
 0x383   : > { %2025 = vmatpush3.bf16.msra.mxu0 %v2024_v16 }
 0x384   : > { %2027 = vmatprep.subr.bf16.mxu0 %v2026_v18 }
 0x449   : > { %v1652_v32 = vpop.f32.mrb[6].mxu0 }
 0x44a   : > { %v1653_v37 = vpop.f32.mrb[7].mxu0 }
 0x44b   : > { %v1654_v38 = vadd.f32 %v1653_v37, %v1652_v32  ;;  %v1113_v32 = vld [vmem:[#allocation7 + $0x258] sm:$0xff]  ;;  %v1131_v37 = vld [vmem:[#allocation7 + $0x2e8] sm:$0xff] }
 0x44d   : > { %v960_v36 = vadd.f32 %v1654_v38, %v1471_v33  ;;  %v1655_v39 = vpop.f32.mrb[8].mxu0  ;;  %v2036_v38 = vpack.c.bf16 %v1113_v32, %v1112_v30 }
 0x44e   : > { %v1656_v40 = vpop.f32.mrb[9].mxu0 }
 0x44f   : > { %2175 = vtanh.f32 %v960_v36  ;;  %v1657_v41 = vadd.f32 %v1656_v40, %v1655_v39  ;;  %v1114_v39 = vld [vmem:[#allocation7 + $0x260] sm:$0xff]  ;;  %v1115_v40 = vld [vmem:[#allocation7 + $0x268] sm:$0xff] }
 0x451   : > { %v965_v42 = vadd.f32 %v1657_v41, %v1471_v33  ;;  %v1130_v33 = vld [vmem:[#allocation7 + $0x2e0] sm:$0xff]  ;;  %v2040_v41 = vpack.c.bf16 %v1115_v40, %v1114_v39 }
 0x452   : > { %v2038_v36 = vpack.c.bf16 %v1131_v37, %v1130_v33 }
 0x453   : > { %2177 = vtanh.f32 %v965_v42  ;;  %v1132_v42 = vld [vmem:[#allocation7 + $0x2f0] sm:$0xff] }
 0x459   : > { %v2176_v43 = vpop.eup %2175 }
 0x45a   : > { %v970_v44 = vadd.f32 %v2176_v43, %v2705_v34  ;;  %v1133_v43 = vld [vmem:[#allocation7 + $0x2f8] sm:$0xff] }
 0x45c   : > { %2179 = vtanh.f32 %v970_v44  ;;  %v1116_v44 = vld [vmem:[#allocation7 + $0x270] sm:$0xff] }
 0x45d   : > { %v2178_v45 = vpop.eup %2177 }
 0x45e   : > { %v971_v46 = vadd.f32 %v2178_v45, %v2708_v35  ;;  %v1230_v35 = vld [vmem:[#allocation8 + $0xa0] sm:$0xff]  ;;  %v2042_v45 = vpack.c.bf16 %v1133_v43, %v1132_v42 }
 0x45f   : > { %v2054_v56 = vpack.c.bf16 %v1231_v55, %v1230_v35 }
 0x460   : > { %2181 = vtanh.f32 %v971_v46  ;;  %v1117_v46 = vld [vmem:[#allocation7 + $0x278] sm:$0xff] }
 0x466   : > { %v2180_v47 = vpop.eup %2179 }
 0x467   : > { %1088 = vmatprep.mubr.f32.mxu1 %v2180_v47  ;;  %v1009_v51 = vrot.slane %v2180_v47, 4 }
 0x46a   : > { %v2182_v50 = vpop.eup %2181 }
 0x46b   : > { %v1010_v52 = vrot.slane %v2182_v50, 4 }
 0x46d   : > { %v1013_v34 = vsel %vm1011_vm4, %v1010_v52, %v1009_v51  ;;  %v1012_v54 = vsel %vm1011_vm4, %v1009_v51, %v1010_v52 }
 0x46e   : > { %1475 = vmatmul.mubr.msk.f32.vlgmr.msra.gmra.mrb[8].mxu1 %vm1014_vm5, %v1013_v34 }
 0x46f   : > { %2049 = vmatpush3.bf16.msra.mxu1 %v2046_v19  ;;  %1093 = vmatprep.mubr.f32.mxu1 %v2182_v50  ;;  %v1108_v19 = vld [vmem:[#allocation7 + $0x230] sm:$0xff] }
 0x470   : > { %2051 = vmatprep.subr.bf16.mxu1 %v2050_v53  ;;  %v2028_v21 = vpack.c.bf16 %v1109_v20, %v1108_v19 }
 0x472   : > { %1094 = vmatmul.mubr.f32.gmra.mrb[10].mxu1 %v1012_v54  ;;  %2029 = vmatpush3.bf16.msra.mxu0 %v2028_v21 }
 0x473   : > { %2053 = vmatpush3.bf16.msra.mxu1 %v2050_v53  ;;  %1819 = vmatprep.mubr.f32.mxu1 %v2180_v47  ;;  %v2044_v47 = vpack.c.bf16 %v1117_v46, %v1116_v44 }
 0x474   : > { %2055 = vmatprep.subr.bf16.mxu1 %v2054_v56  ;;  %2031 = vmatprep.subr.bf16.mxu0 %v2030_v24 }
 0x476   : > { %2033 = vmatpush3.bf16.msra.mxu0 %v2032_v27 }
 0x477   : > { %2057 = vmatpush3.bf16.msra.mxu1 %v2054_v56  ;;  %2035 = vmatprep.subr.bf16.mxu0 %v2034_v31 }
 0x478   : > { %2059 = vmatprep.subr.bf16.mxu1 %v2058_v60 }
 0x47a   : > { %2037 = vmatpush3.bf16.msra.mxu0 %v2036_v38 }
 0x47b   : > { %2061 = vmatpush3.bf16.msra.mxu1 %v2058_v60  ;;  %2039 = vmatprep.subr.bf16.mxu0 %v2038_v36 }
 0x47c   : > { %2063 = vmatprep.subr.bf16.mxu1 %v2062_v0 }
 0x47e   : > { %2041 = vmatpush3.bf16.msra.mxu0 %v2040_v41 }
 0x47f   : > { %2065 = vmatpush3.bf16.msra.mxu1 %v2062_v0  ;;  %2043 = vmatprep.subr.bf16.mxu0 %v2042_v45 }
 0x480   : > { %2067 = vmatprep.subr.bf16.mxu1 %v2066_v4 }
 0x482   : > { %2045 = vmatpush3.bf16.msra.mxu0 %v2044_v47 }
 0x483   : > { %2069 = vmatpush3.bf16.msra.mxu1 %v2066_v4 }
 0x484   : > { %2071 = vmatprep.subr.bf16.mxu1 %v2070_v7 }
 0x487   : > { %2073 = vmatpush3.bf16.msra.mxu1 %v2070_v7 }
 0x488   : > { %2075 = vmatprep.subr.bf16.mxu1 %v2074_v10 }
 0x48b   : > { %2077 = vmatpush3.bf16.msra.mxu1 %v2074_v10 }
 0x48e   : > { %1820 = vmatmul.mubr.f32.vlgmr.msra.gmra.mrb[12].mxu1 %v2182_v50 }
 0x541   : > { %v1690_v48 = vpop.f32.mrb[8].mxu1 }
 0x542   : > { %v1691_v50 = vpop.f32.mrb[9].mxu1 }
 0x543   : > { %v1692_v51 = vadd.f32 %v1691_v50, %v1690_v48 }
 0x545   : > { %v1091_v52 = vadd.f32 %v1692_v51, %v1474_v49  ;;  %v1693_v53 = vpop.f32.mrb[10].mxu1 }
 0x546   : > { %v1694_v34 = vpop.f32.mrb[11].mxu1 }
 0x547   : > { %2183 = vtanh.f32 %v1091_v52  ;;  %v1695_v54 = vadd.f32 %v1694_v34, %v1693_v53 }
 0x549   : > { %v1096_v35 = vadd.f32 %v1695_v54, %v1474_v49 }
 0x54b   : > { %2185 = vtanh.f32 %v1096_v35 }
 0x551   : > { %v2184_v55 = vpop.eup %2183 }
 0x552   : > { %1212 = vmatprep.mubr.f32.mxu0 %v2184_v55  ;;  %v1136_v57 = vrot.slane %v2184_v55, 4 }
 0x555   : > { %v2186_v56 = vpop.eup %2185 }
 0x556   : > { %v1137_v59 = vrot.slane %v2186_v56, 4 }
 0x558   : > { %v1139_v60 = vsel %vm1011_vm4, %v1137_v59, %v1136_v57  ;;  %v1138_v61 = vsel %vm1011_vm4, %v1136_v57, %v1137_v59 }
 0x559   : > { %1478 = vmatmul.mubr.msk.f32.vlgmr.msra.gmra.mrb[10].mxu0 %vm1014_vm5, %v1139_v60 }
 0x55a   : > { %1217 = vmatprep.mubr.f32.mxu0 %v2186_v56 }
 0x55d   : > { %1218 = vmatmul.mubr.f32.gmra.mrb[12].mxu0 %v1138_v61 }
 0x561   : > { %v1821_v63 = vpop.f32.mrb[12].mxu1 }
 0x562   : > { %v1316_v0 = vpop.f32.mrb[13].mxu1  ;;  %v1322_v13 = vadd.f32 %v1821_v63, %v1480_v9 }
 0x563   : > { %v1317_v10 = vadd.f32 %v1480_v9, %v1316_v0 }
 0x62c   : > { %v1728_v2 = vpop.f32.mrb[10].mxu0 }
 0x62d   : > { %v1729_v4 = vpop.f32.mrb[11].mxu0 }
 0x62e   : > { %v1730_v5 = vadd.f32 %v1729_v4, %v1728_v2 }
 0x630   : > { %v1215_v6 = vadd.f32 %v1730_v5, %v1477_v3  ;;  %v1731_v7 = vpop.f32.mrb[12].mxu0 }
 0x631   : > { %v1732_v58 = vpop.f32.mrb[13].mxu0 }
 0x632   : > { %2187 = vtanh.f32 %v1215_v6  ;;  %v1733_v8 = vadd.f32 %v1732_v58, %v1731_v7 }
 0x634   : > { %v1220_v1 = vadd.f32 %v1733_v8, %v1477_v3 }
 0x636   : > { %2189 = vtanh.f32 %v1220_v1 }
 0x63c   : > { %v2188_v11 = vpop.eup %2187 }
 0x63d   : > { %v1325_v12 = vadd.f32 %v2188_v11, %v1317_v10 }
 0x63f   : > { %2191 = vtanh.f32 %v1325_v12 }
 0x640   : > { %v2190_v14 = vpop.eup %2189 }
 0x641   : > { %v1326_v15 = vadd.f32 %v2190_v14, %v1322_v13 }
 0x643   : > { %2193 = vtanh.f32 %v1326_v15 }
 0x649   : > { %v2192_v16 = vpop.eup %2191 }
 0x64a   : > { %1329 = vst [vmem:[%s340_s10] sm:$0xff] %v2192_v16 }
 0x64d   : > { %v2194_v62 = vpop.eup %2193 }
 0x64e   : > { %1330 = vst [vmem:[%s340_s10 + $0x8] sm:$0xff] %v2194_v62 }
 0x64f   : > { %2322 = shalt.err (!%p2319_p4)
}
 0x650   : > { %s2323_s8 = scalar_lea.hbm %s2764_s21, 256  ;;  %s2327_s13 = scalar_lea.hbm %s2817_s7, 512 }
 0x651   : > { %p2324_p9 = scmp.ne.s32.totalorder %s2764_s21, %s2323_s8  ;;  %p2328_p8 = scmp.lt.u32.totalorder %s2764_s21, %s2817_s7 }
 0x652   : > { %p2329_p13 = scmp.lt.u32.totalorder %s2327_s13, %s2323_s8  ;;  %p2331_p10 = scmp.lt.u32.totalorder %s2323_s8, %s2764_s21 }
 0x653   : > { %p2325_p0 = pnand %p2324_p9, %p2588_p5 }
 0x654   : > { %p2330_p6 = por %p2329_p13, %p2328_p8 }
 0x655   : > { %p2326_p11 = pneg %p2325_p0 }
 0x656   : > { %p2332_p3 = por %p2331_p10, %p2330_p6 }
 0x658   : > { %p2333_p7 = pnand %p2332_p3, %p2326_p11 }
 0x65a   : > { %2336 = shalt.err (!%p2333_p7)
}
 0x65b   : > { %s2392_s12 = smov 128   ;;  %s2393_s20 = smov 8  }
 0x65c   : > { %2092 = dma.vmem_to_hbm [thread:$0]  (%p2588_p5), %s2766_s14, 256, %s2764_s21, %s1332_s16, %s2392_s12, %s2392_s12, %s2393_s20  }
 0x65d PF: > { %s2837_s29 = sld [smem:[#allocation15_spill]]  ;;  %s1360_s28 = sand.u32 1, %s2371_s24  }
 0x65e   : > { %p2839_p1 = scmp.ge.s32.totalorder %s2383_s27, 2  ;;  %s1361_s23 = scalar_lea.sflag [#allocation4], %s1360_s28 }
 0x663   : > { %p2838_p12 = scmp.ne.s32.totalorder %s2837_s29, 0 }
 0x665   : > { %p2109_p2 = pnand %p2839_p1, %p2838_p12 }
 0x667   : > { %2366 = dma.done.wait (!%p2109_p2), %s1361_s23, 256  }
 0x668   : > { %2368 = vsyncadd (!%p2109_p2), %s1361_s23, 4294967040  ;;  %p22_p4 = scmp.ge.s32.totalorder %s2574_s22, 4   ;;  %s2840_s24 = smov %s2375_s25 }
 0x669   : > { %s2841_s25 = smov %s2379_s26  ;;  %s2842_s26 = smov %s2584_s18 }
 0x66a   : > { %s2843_s27 = smov %s2574_s22  ;;  %24 = sbr.rel (!%p22_p4) target bundleno = 7 (0x7), region = 115 }
 0x671   :  { %1366 = vsyncpa [#allocation3], 1 }
 0x672   :  { %1368 = vsyncpa [#allocation3 + $0x1], 1 }
 0x673   :  { %1369 = vsyncpa [#allocation6], 1 }
 0x674   :  { %1370 = vsyncpa [#allocation9], 1 }
 0x675   :  { %1371 = vsyncpa [#allocation4], 1 }
 0x676   :  { %1373 = vsyncpa [#allocation4 + $0x1], 1 }

</bundles_post_ra>
